<compile_context>
chip_gen: v7x
topology: tpu7x:2x2x1
jax: 0.10.0
libtpu: 0.0.40
codegen_flags: <defaults>
</compile_context>

<pallas_src>
import functools
import math

import jax
import jax.numpy as jnp
from jax.experimental import pallas as pl
from jax.experimental.pallas import tpu as pltpu

_LN_EPS = 1e-5
_NEG_INF = -1e30


def _layernorm(h, w, b, eps=_LN_EPS):
    # Matches F.layer_norm over the last dim (biased variance).  f32 math.
    mu = jnp.mean(h, axis=-1, keepdims=True)
    xc = h - mu
    var = jnp.mean(xc * xc, axis=-1, keepdims=True)
    return xc * jax.lax.rsqrt(var + eps) * w + b


# --------------------------------------------------------------------------
# Kernel 1: ln_1 + fused QKV projection (lane-dense outputs, K pre-transposed)
# --------------------------------------------------------------------------
def qkv_kernel(x_ref, ln1_w_ref, ln1_b_ref, wqkv_ref, bqkv_ref,
               q_ref, kt_ref, v_ref, *, n_head, head_dim):
    x = x_ref[0].astype(jnp.float32)                         # (tq, C)
    C = x.shape[-1]
    h = _layernorm(x, ln1_w_ref[...], ln1_b_ref[...]).astype(jnp.bfloat16)

    # Single fused matmul: (tq, C) @ (C, 3C), f32 accumulation.
    qkv = jnp.dot(h, wqkv_ref[...],
                  preferred_element_type=jnp.float32) + bqkv_ref[...]

    # q columns are pre-scaled by 1/sqrt(hd) (folded into W_qkv / b_qkv).
    q_ref[0] = qkv[:, :C].astype(q_ref.dtype)                # lane-dense store
    v_ref[0, 0] = qkv[:, 2 * C:].astype(v_ref.dtype)         # lane-dense store

    # Keys stored transposed per head: (hd, tq) with lane dim = tq (dense).
    # The transpose happens once here (amortized over all query tiles) instead
    # of once per (query tile, head) inside the attention kernel.
    for hh in range(n_head):
        k_h = qkv[:, C + hh * head_dim: C + (hh + 1) * head_dim]   # (tq, hd) f32
        kt_ref[0, hh, 0] = k_h.T.astype(kt_ref.dtype)              # (hd, tq)


# --------------------------------------------------------------------------
# Kernel 2: causal attention (online softmax over key tiles, causal skip)
#           + single output projection + residual + ln_2 + MLP + residual
# --------------------------------------------------------------------------
def attn_mlp_kernel(x_ref, q_ref, kt_ref, v_ref,
                    wproj_ref, bproj_ref, ln2_w_ref, ln2_b_ref,
                    wfc_ref, bfc_ref, wfc2_ref, bfc2_ref,
                    o_ref, y_ref, *, n_head, head_dim, kv_block):
    qi = pl.program_id(1)
    x = x_ref[0].astype(jnp.float32)                         # (tq, C)
    tq = x.shape[0]

    # Global query-row / per-tile key-column indices for the causal mask.
    row_ids = jax.lax.broadcasted_iota(jnp.int32, (tq, kv_block), 0) + qi * tq
    col_ids = jax.lax.broadcasted_iota(jnp.int32, (tq, kv_block), 1)
    # kv_block == tq, so key tiles 0..qi cover every unmasked key.
    num_kv = qi + 1

    for hh in range(n_head):   # static unroll; cross-iteration state lives in y_ref
        qh = q_ref[0, :, hh * head_dim:(hh + 1) * head_dim]  # (tq, hd) bf16, pre-scaled

        def kv_step(j, carry, qh=qh, hh=hh):
            m_prev, l_prev, acc_prev = carry
            kh = kt_ref[0, hh, j]                                        # (hd, tk) bf16
            vh = v_ref[0, j, :, hh * head_dim:(hh + 1) * head_dim]       # (tk, hd) bf16
            # scores: plain (tq,hd)@(hd,tk) dot -- no RHS transpose/relayout.
            s = jnp.dot(qh, kh, preferred_element_type=jnp.float32)      # (tq, tk)
            s = jnp.where(col_ids + j * kv_block <= row_ids, s, _NEG_INF)
            m_cur = jnp.maximum(m_prev, jnp.max(s, axis=-1, keepdims=True))
            alpha = jnp.exp(m_prev - m_cur)
            p = jnp.exp(s - m_cur)
            l_new = alpha * l_prev + jnp.sum(p, axis=-1, keepdims=True)
            acc_new = alpha * acc_prev + jnp.dot(p.astype(jnp.bfloat16), vh,
                                                 preferred_element_type=jnp.float32)
            return m_cur, l_new, acc_new

        m0 = jnp.full((tq, 1), _NEG_INF, jnp.float32)
        l0 = jnp.zeros((tq, 1), jnp.float32)
        a0 = jnp.zeros((tq, head_dim), jnp.float32)
        _, l_i, acc = jax.lax.fori_loop(0, num_kv, kv_step, (m0, l0, a0))

        yh = acc * pl.reciprocal(l_i, approx=True)           # (tq, hd)
        y_ref[:, hh * head_dim:(hh + 1) * head_dim] = yh.astype(jnp.bfloat16)

    # Heads already concatenated in y_ref -> ONE (tq,C)@(C,C) projection.
    att = jnp.dot(y_ref[...], wproj_ref[...],
                  preferred_element_type=jnp.float32) + bproj_ref[...]
    x = x + att                                              # first residual

    # ---------------- ln_2 + MLP ----------------
    h2 = _layernorm(x, ln2_w_ref[...], ln2_b_ref[...])
    f = jnp.dot(h2.astype(jnp.bfloat16), wfc_ref[...],
                preferred_element_type=jnp.float32) + bfc_ref[...]
    # TODO(synk): PyTorch nn.GELU() default is the exact erf form; tanh approx differs by <~1e-3.
    f = 0.5 * f * (1.0 + jnp.tanh(0.7978845608028654 * (f + 0.044715 * f * f * f)))
    m_out = jnp.dot(f.astype(jnp.bfloat16), wfc2_ref[...],
                    preferred_element_type=jnp.float32) + bfc2_ref[...]

    o_ref[0] = (x + m_out).astype(o_ref.dtype)               # second residual


# --------------------------------------------------------------------------
# Wrapper
# --------------------------------------------------------------------------
def gpt_block(x, params, n_head, *, q_block=128, single_buffer_weights=True):
    B, T, C = x.shape
    assert C % n_head == 0
    hd = C // n_head
    (ln1_w, ln1_b, w_qkv, b_qkv, w_proj, b_proj,
     ln2_w, ln2_b, w_fc, b_fc, w_fc2, b_fc2) = params

    # Sequence tile size: require a clean tiling (assert instead of silently
    # blowing VMEM with tq = T for large unaligned T).
    if T % q_block == 0:
        tq = q_block
    else:
        assert T <= q_block, (
            f"T={T} must be a multiple of q_block={q_block} or <= q_block")
        tq = T
    n_qt = T // tq
    n_kt = n_qt                      # key tiles, kv_block == tq

    # --- wrapper-side weight layout: fused QKV (scale folded into Q), bf16 ---
    scale = 1.0 / math.sqrt(hd)
    col_scale = jnp.concatenate([jnp.full((C,), scale, jnp.float32),
                                 jnp.ones((2 * C,), jnp.float32)])
    wqkv_bf = (w_qkv.astype(jnp.float32) * col_scale[None, :]).astype(jnp.bfloat16)
    bqkv_f32 = b_qkv.reshape(1, 3 * C).astype(jnp.float32) * col_scale[None, :]
    wproj_bf = w_proj.astype(jnp.bfloat16)
    wfc_bf = w_fc.astype(jnp.bfloat16)
    wfc2_bf = w_fc2.astype(jnp.bfloat16)

    def _const_spec(a):
        nd = a.ndim
        if single_buffer_weights:
            # Grid-invariant block: a single VMEM buffer is enough.
            return pl.BlockSpec(a.shape, lambda b, i, nd=nd: (0,) * nd,
                                pipeline_mode=pl.Buffered(1))
        return pl.BlockSpec(a.shape, lambda b, i, nd=nd: (0,) * nd)

    cparams = pltpu.CompilerParams(
        dimension_semantics=("parallel", "parallel"),
        vmem_limit_bytes=48 * 1024 * 1024,   # leaves headroom on v7x (64 MiB/TC)
    )

    # ---------------- Kernel 1: ln_1 + fused QKV ----------------
    q_shape = jax.ShapeDtypeStruct((B, T, C), jnp.bfloat16)
    kt_shape = jax.ShapeDtypeStruct((B, n_head, n_kt, hd, tq), jnp.bfloat16)
    v_shape = jax.ShapeDtypeStruct((B, n_kt, tq, C), jnp.bfloat16)
    q, kt, v = pl.pallas_call(
        functools.partial(qkv_kernel, n_head=n_head, head_dim=hd),
        out_shape=(q_shape, kt_shape, v_shape),
        grid=(B, n_qt),
        in_specs=[
            pl.BlockSpec((1, tq, C), lambda b, i: (b, i, 0)),           # x rows
            _const_spec(ln1_w), _const_spec(ln1_b),
            _const_spec(wqkv_bf), _const_spec(bqkv_f32),
        ],
        out_specs=(
            pl.BlockSpec((1, tq, C), lambda b, i: (b, i, 0)),           # q (lane-dense)
            pl.BlockSpec((1, n_head, 1, hd, tq), lambda b, i: (b, 0, i, 0, 0)),  # k^T
            pl.BlockSpec((1, 1, tq, C), lambda b, i: (b, i, 0, 0)),     # v (lane-dense)
        ),
        compiler_params=cparams,
    )(x, ln1_w, ln1_b, wqkv_bf, bqkv_f32)

    # -------- Kernel 2: attention + proj + residual + ln_2 + MLP + residual --------
    out = pl.pallas_call(
        functools.partial(attn_mlp_kernel, n_head=n_head, head_dim=hd, kv_block=tq),
        out_shape=jax.ShapeDtypeStruct((B, T, C), x.dtype),
        grid=(B, n_qt),
        in_specs=[
            pl.BlockSpec((1, tq, C), lambda b, i: (b, i, 0)),           # x rows (residual)
            pl.BlockSpec((1, tq, C), lambda b, i: (b, i, 0)),           # q rows
            pl.BlockSpec((1, n_head, n_kt, hd, tq), lambda b, i: (b, 0, 0, 0, 0)),  # all keys
            pl.BlockSpec((1, n_kt, tq, C), lambda b, i: (b, 0, 0, 0)),  # all values
            _const_spec(wproj_bf), _const_spec(b_proj),
            _const_spec(ln2_w), _const_spec(ln2_b),
            _const_spec(wfc_bf), _const_spec(b_fc),
            _const_spec(wfc2_bf), _const_spec(b_fc2),
        ],
        out_specs=pl.BlockSpec((1, tq, C), lambda b, i: (b, i, 0)),
        scratch_shapes=[pltpu.VMEM((tq, C), jnp.bfloat16)],             # concat'd heads
        compiler_params=cparams,
    )(x, q, kt, v, wproj_bf, b_proj, ln2_w, ln2_b, wfc_bf, b_fc, wfc2_bf, b_fc2)
    return out


def init_params(key, n_embd):
    C = n_embd
    ks = jax.random.split(key, 6)
    std = 0.02
    ln1_w = jnp.ones((1, C), jnp.float32)
    ln1_b = jnp.zeros((1, C), jnp.float32)
    w_qkv = std * jax.random.normal(ks[0], (C, 3 * C), jnp.float32)
    b_qkv = jnp.zeros((1, 3 * C), jnp.float32)
    w_proj = std * jax.random.normal(ks[1], (C, C), jnp.float32)
    b_proj = jnp.zeros((1, C), jnp.float32)
    ln2_w = jnp.ones((1, C), jnp.float32)
    ln2_b = jnp.zeros((1, C), jnp.float32)
    w_fc = std * jax.random.normal(ks[2], (C, 4 * C), jnp.float32)
    b_fc = jnp.zeros((1, 4 * C), jnp.float32)
    w_fc2 = std * jax.random.normal(ks[3], (4 * C, C), jnp.float32)
    b_fc2 = jnp.zeros((1, C), jnp.float32)
    return [ln1_w, ln1_b, w_qkv, b_qkv, w_proj, b_proj,
            ln2_w, ln2_b, w_fc, b_fc, w_fc2, b_fc2]


if __name__ == "__main__":
    # Small synthetic config consistent with the Block forward:
    # batch=2, seq=8, n_embd=32, n_head=4 (head_dim=8).
    B, T, C, n_head = 2, 8, 32, 4

    key = jax.random.PRNGKey(0)
    kx, kp = jax.random.split(key)
    x = jax.random.normal(kx, (B, T, C), jnp.float32)
    params = init_params(kp, C)

    try:
        out = gpt_block(x, params, n_head)
    except Exception:
        # Fallback if this jax build rejects pipeline_mode=pl.Buffered(1).
        out = gpt_block(x, params, n_head, single_buffer_weights=False)
    out = jax.block_until_ready(out)
    assert out.shape == (B, T, C) and out.dtype == jnp.float32
    assert bool(jnp.all(jnp.isfinite(out)))
    print("KERNEL_OK")
</pallas_src>

<mosaic_0001>
module attributes {stable_mosaic.version = 11 : i64} {
  func.func @qkv_kernel(%arg0: i32, %arg1: i32, %arg2: memref<1x8x32xf32, #tpu.memory_space<vmem>>, %arg3: memref<1x32xf32, #tpu.memory_space<vmem>>, %arg4: memref<1x32xf32, #tpu.memory_space<vmem>>, %arg5: memref<32x96xbf16, #tpu.memory_space<vmem>>, %arg6: memref<1x96xf32, #tpu.memory_space<vmem>>, %arg7: memref<1x8x32xbf16, #tpu.memory_space<vmem>>, %arg8: memref<1x4x1x8x8xbf16, #tpu.memory_space<vmem>>, %arg9: memref<1x1x8x32xbf16, #tpu.memory_space<vmem>>) attributes {dimension_semantics = [#tpu.dimension_semantics<parallel>, #tpu.dimension_semantics<parallel>], iteration_bounds = array<i64: 2, 1>, scalar_prefetch = 0 : i64, scratch_operands = 0 : i64, tpu.core_type = #tpu.core_type<tc>, window_params = [{transform_indices = @transform_0, window_bounds = array<i64: 1, 8, 32>}, {pipeline_mode = #tpu.pipeline_mode<synchronous>, transform_indices = @transform_1, window_bounds = array<i64: 1, 32>}, {pipeline_mode = #tpu.pipeline_mode<synchronous>, transform_indices = @transform_2, window_bounds = array<i64: 1, 32>}, {pipeline_mode = #tpu.pipeline_mode<synchronous>, transform_indices = @transform_3, window_bounds = array<i64: 32, 96>}, {pipeline_mode = #tpu.pipeline_mode<synchronous>, transform_indices = @transform_4, window_bounds = array<i64: 1, 96>}, {transform_indices = @transform_5, window_bounds = array<i64: 1, 8, 32>}, {transform_indices = @transform_6, window_bounds = array<i64: 1, 4, 1, 8, 8>}, {transform_indices = @transform_7, window_bounds = array<i64: 1, 1, 8, 32>}]} {
    %c0 = arith.constant 0 : index
    %c0_0 = arith.constant 0 : index
    %c0_1 = arith.constant 0 : index
    %0 = vector.load %arg2[%c0, %c0_0, %c0_1] : memref<1x8x32xf32, #tpu.memory_space<vmem>>, vector<1x8x32xf32>
    %1 = vector.shape_cast %0 : vector<1x8x32xf32> to vector<8x32xf32>
    %c0_2 = arith.constant 0 : index
    %c0_3 = arith.constant 0 : index
    %2 = vector.load %arg3[%c0_2, %c0_3] : memref<1x32xf32, #tpu.memory_space<vmem>>, vector<1x32xf32>
    %c0_4 = arith.constant 0 : index
    %c0_5 = arith.constant 0 : index
    %3 = vector.load %arg4[%c0_4, %c0_5] : memref<1x32xf32, #tpu.memory_space<vmem>>, vector<1x32xf32>
    %cst = arith.constant dense<0.000000e+00> : vector<8xf32>
    %4 = vector.multi_reduction <add>, %1, %cst [1] : vector<8x32xf32> to vector<8xf32>
    %5 = vector.shape_cast %4 : vector<8xf32> to vector<8x1xf32>
    %cst_6 = arith.constant 3.200000e+01 : f32
    %6 = vector.broadcast %cst_6 : f32 to vector<8x1xf32>
    %7 = arith.divf %5, %6 : vector<8x1xf32>
    %8 = vector.broadcast %7 : vector<8x1xf32> to vector<8x32xf32>
    %9 = arith.subf %1, %8 : vector<8x32xf32>
    %10 = arith.mulf %9, %9 : vector<8x32xf32>
    %cst_7 = arith.constant dense<0.000000e+00> : vector<8xf32>
    %11 = vector.multi_reduction <add>, %10, %cst_7 [1] : vector<8x32xf32> to vector<8xf32>
    %12 = vector.shape_cast %11 : vector<8xf32> to vector<8x1xf32>
    %cst_8 = arith.constant 3.200000e+01 : f32
    %13 = vector.broadcast %cst_8 : f32 to vector<8x1xf32>
    %14 = arith.divf %12, %13 : vector<8x1xf32>
    %cst_9 = arith.constant 9.99999974E-6 : f32
    %15 = vector.broadcast %cst_9 : f32 to vector<8x1xf32>
    %16 = arith.addf %14, %15 : vector<8x1xf32>
    %17 = math.rsqrt %16 : vector<8x1xf32>
    %18 = vector.broadcast %17 : vector<8x1xf32> to vector<8x32xf32>
    %19 = arith.mulf %9, %18 : vector<8x32xf32>
    %20 = vector.broadcast %2 : vector<1x32xf32> to vector<8x32xf32>
    %21 = arith.mulf %19, %20 : vector<8x32xf32>
    %22 = vector.broadcast %3 : vector<1x32xf32> to vector<8x32xf32>
    %23 = arith.addf %21, %22 : vector<8x32xf32>
    %24 = arith.truncf %23 : vector<8x32xf32> to vector<8x32xbf16>
    %c0_10 = arith.constant 0 : index
    %c0_11 = arith.constant 0 : index
    %25 = vector.load %arg5[%c0_10, %c0_11] : memref<32x96xbf16, #tpu.memory_space<vmem>>, vector<32x96xbf16>
    %cst_12 = arith.constant dense<0.000000e+00> : vector<8x96xf32>
    %26 = tpu.matmul %24, %25, %cst_12 {dimension_numbers = #tpu.dot_dimension_numbers<[1], [0], [0], [1], [0, 0, 1, 1], [], []>} : vector<8x32xbf16>, vector<32x96xbf16>, vector<8x96xf32> -> vector<8x96xf32>
    %c0_13 = arith.constant 0 : index
    %c0_14 = arith.constant 0 : index
    %27 = vector.load %arg6[%c0_13, %c0_14] : memref<1x96xf32, #tpu.memory_space<vmem>>, vector<1x96xf32>
    %28 = vector.broadcast %27 : vector<1x96xf32> to vector<8x96xf32>
    %29 = arith.addf %26, %28 : vector<8x96xf32>
    %30 = vector.extract_strided_slice %29 {offsets = [0, 0], sizes = [8, 32], strides = [1, 1]} : vector<8x96xf32> to vector<8x32xf32>
    %31 = arith.truncf %30 : vector<8x32xf32> to vector<8x32xbf16>
    %c0_15 = arith.constant 0 : index
    %c0_16 = arith.constant 0 : index
    %c0_17 = arith.constant 0 : index
    %32 = vector.load %arg7[%c0_15, %c0_16, %c0_17] : memref<1x8x32xbf16, #tpu.memory_space<vmem>>, vector<1x8x32xbf16>
    %33 = vector.shape_cast %32 : vector<1x8x32xbf16> to vector<8x32xbf16>
    %34 = vector.shape_cast %31 : vector<8x32xbf16> to vector<1x8x32xbf16>
    tpu.vector_store %arg7[%c0_15, %c0_16, %c0_17], %34 {strides = array<i32>} : memref<1x8x32xbf16, #tpu.memory_space<vmem>>, vector<1x8x32xbf16>,
    %35 = vector.extract_strided_slice %29 {offsets = [0, 64], sizes = [8, 32], strides = [1, 1]} : vector<8x96xf32> to vector<8x32xf32>
    %36 = arith.truncf %35 : vector<8x32xf32> to vector<8x32xbf16>
    %c0_18 = arith.constant 0 : index
    %c0_19 = arith.constant 0 : index
    %c0_20 = arith.constant 0 : index
    %c0_21 = arith.constant 0 : index
    %37 = vector.load %arg9[%c0_18, %c0_19, %c0_20, %c0_21] : memref<1x1x8x32xbf16, #tpu.memory_space<vmem>>, vector<1x1x8x32xbf16>
    %38 = vector.shape_cast %37 : vector<1x1x8x32xbf16> to vector<8x32xbf16>
    %39 = vector.shape_cast %36 : vector<8x32xbf16> to vector<1x1x8x32xbf16>
    tpu.vector_store %arg9[%c0_18, %c0_19, %c0_20, %c0_21], %39 {strides = array<i32>} : memref<1x1x8x32xbf16, #tpu.memory_space<vmem>>, vector<1x1x8x32xbf16>,
    %40 = vector.extract_strided_slice %29 {offsets = [0, 32], sizes = [8, 8], strides = [1, 1]} : vector<8x96xf32> to vector<8x8xf32>
    %41 = tpu.transpose %40, [1, 0] : vector<8x8xf32> -> vector<8x8xf32>
    %42 = arith.truncf %41 : vector<8x8xf32> to vector<8x8xbf16>
    %c0_22 = arith.constant 0 : index
    %c0_23 = arith.constant 0 : index
    %c0_24 = arith.constant 0 : index
    %c0_25 = arith.constant 0 : index
    %c0_26 = arith.constant 0 : index
    %43 = vector.load %arg8[%c0_22, %c0_23, %c0_24, %c0_25, %c0_26] : memref<1x4x1x8x8xbf16, #tpu.memory_space<vmem>>, vector<1x1x1x8x8xbf16>
    %44 = vector.shape_cast %43 : vector<1x1x1x8x8xbf16> to vector<8x8xbf16>
    %45 = vector.shape_cast %42 : vector<8x8xbf16> to vector<1x1x1x8x8xbf16>
    tpu.vector_store %arg8[%c0_22, %c0_23, %c0_24, %c0_25, %c0_26], %45 {strides = array<i32>} : memref<1x4x1x8x8xbf16, #tpu.memory_space<vmem>>, vector<1x1x1x8x8xbf16>,
    %46 = vector.extract_strided_slice %29 {offsets = [0, 40], sizes = [8, 8], strides = [1, 1]} : vector<8x96xf32> to vector<8x8xf32>
    %47 = tpu.transpose %46, [1, 0] : vector<8x8xf32> -> vector<8x8xf32>
    %48 = arith.truncf %47 : vector<8x8xf32> to vector<8x8xbf16>
    %c0_27 = arith.constant 0 : index
    %c1 = arith.constant 1 : index
    %c0_28 = arith.constant 0 : index
    %c0_29 = arith.constant 0 : index
    %c0_30 = arith.constant 0 : index
    %49 = vector.load %arg8[%c0_27, %c1, %c0_28, %c0_29, %c0_30] : memref<1x4x1x8x8xbf16, #tpu.memory_space<vmem>>, vector<1x1x1x8x8xbf16>
    %50 = vector.shape_cast %49 : vector<1x1x1x8x8xbf16> to vector<8x8xbf16>
    %51 = vector.shape_cast %48 : vector<8x8xbf16> to vector<1x1x1x8x8xbf16>
    tpu.vector_store %arg8[%c0_27, %c1, %c0_28, %c0_29, %c0_30], %51 {strides = array<i32>} : memref<1x4x1x8x8xbf16, #tpu.memory_space<vmem>>, vector<1x1x1x8x8xbf16>,
    %52 = vector.extract_strided_slice %29 {offsets = [0, 48], sizes = [8, 8], strides = [1, 1]} : vector<8x96xf32> to vector<8x8xf32>
    %53 = tpu.transpose %52, [1, 0] : vector<8x8xf32> -> vector<8x8xf32>
    %54 = arith.truncf %53 : vector<8x8xf32> to vector<8x8xbf16>
    %c0_31 = arith.constant 0 : index
    %c2 = arith.constant 2 : index
    %c0_32 = arith.constant 0 : index
    %c0_33 = arith.constant 0 : index
    %c0_34 = arith.constant 0 : index
    %55 = vector.load %arg8[%c0_31, %c2, %c0_32, %c0_33, %c0_34] : memref<1x4x1x8x8xbf16, #tpu.memory_space<vmem>>, vector<1x1x1x8x8xbf16>
    %56 = vector.shape_cast %55 : vector<1x1x1x8x8xbf16> to vector<8x8xbf16>
    %57 = vector.shape_cast %54 : vector<8x8xbf16> to vector<1x1x1x8x8xbf16>
    tpu.vector_store %arg8[%c0_31, %c2, %c0_32, %c0_33, %c0_34], %57 {strides = array<i32>} : memref<1x4x1x8x8xbf16, #tpu.memory_space<vmem>>, vector<1x1x1x8x8xbf16>,
    %58 = vector.extract_strided_slice %29 {offsets = [0, 56], sizes = [8, 8], strides = [1, 1]} : vector<8x96xf32> to vector<8x8xf32>
    %59 = tpu.transpose %58, [1, 0] : vector<8x8xf32> -> vector<8x8xf32>
    %60 = arith.truncf %59 : vector<8x8xf32> to vector<8x8xbf16>
    %c0_35 = arith.constant 0 : index
    %c3 = arith.constant 3 : index
    %c0_36 = arith.constant 0 : index
    %c0_37 = arith.constant 0 : index
    %c0_38 = arith.constant 0 : index
    %61 = vector.load %arg8[%c0_35, %c3, %c0_36, %c0_37, %c0_38] : memref<1x4x1x8x8xbf16, #tpu.memory_space<vmem>>, vector<1x1x1x8x8xbf16>
    %62 = vector.shape_cast %61 : vector<1x1x1x8x8xbf16> to vector<8x8xbf16>
    %63 = vector.shape_cast %60 : vector<8x8xbf16> to vector<1x1x1x8x8xbf16>
    tpu.vector_store %arg8[%c0_35, %c3, %c0_36, %c0_37, %c0_38], %63 {strides = array<i32>} : memref<1x4x1x8x8xbf16, #tpu.memory_space<vmem>>, vector<1x1x1x8x8xbf16>,
    return
  }
  func.func @transform_0(%arg0: i32, %arg1: i32) -> (i32, i32, i32) {
    %c0_i32 = arith.constant 0 : i32
    %c0_i32_0 = arith.constant 0 : i32
    return %arg0, %arg1, %c0_i32 : i32, i32, i32
  }
  func.func @transform_1(%arg0: i32, %arg1: i32) -> (i32, i32) {
    %c0_i32 = arith.constant 0 : i32
    %c0_i32_0 = arith.constant 0 : i32
    %c0_i32_1 = arith.constant 0 : i32
    return %c0_i32, %c0_i32_0 : i32, i32
  }
  func.func @transform_2(%arg0: i32, %arg1: i32) -> (i32, i32) {
    %c0_i32 = arith.constant 0 : i32
    %c0_i32_0 = arith.constant 0 : i32
    %c0_i32_1 = arith.constant 0 : i32
    return %c0_i32, %c0_i32_0 : i32, i32
  }
  func.func @transform_3(%arg0: i32, %arg1: i32) -> (i32, i32) {
    %c0_i32 = arith.constant 0 : i32
    %c0_i32_0 = arith.constant 0 : i32
    %c0_i32_1 = arith.constant 0 : i32
    return %c0_i32, %c0_i32_0 : i32, i32
  }
  func.func @transform_4(%arg0: i32, %arg1: i32) -> (i32, i32) {
    %c0_i32 = arith.constant 0 : i32
    %c0_i32_0 = arith.constant 0 : i32
    %c0_i32_1 = arith.constant 0 : i32
    return %c0_i32, %c0_i32_0 : i32, i32
  }
  func.func @transform_5(%arg0: i32, %arg1: i32) -> (i32, i32, i32) {
    %c0_i32 = arith.constant 0 : i32
    %c0_i32_0 = arith.constant 0 : i32
    return %arg0, %arg1, %c0_i32 : i32, i32, i32
  }
  func.func @transform_6(%arg0: i32, %arg1: i32) -> (i32, i32, i32, i32, i32) {
    %c0_i32 = arith.constant 0 : i32
    %c0_i32_0 = arith.constant 0 : i32
    %c0_i32_1 = arith.constant 0 : i32
    %c0_i32_2 = arith.constant 0 : i32
    return %arg0, %c0_i32, %arg1, %c0_i32_0, %c0_i32_1 : i32, i32, i32, i32, i32
  }
  func.func @transform_7(%arg0: i32, %arg1: i32) -> (i32, i32, i32, i32) {
    %c0_i32 = arith.constant 0 : i32
    %c0_i32_0 = arith.constant 0 : i32
    %c0_i32_1 = arith.constant 0 : i32
    return %arg0, %arg1, %c0_i32, %c0_i32_0 : i32, i32, i32, i32
  }
}

module attributes {stable_mosaic.version = 11 : i64} {
  func.func @qkv_kernel(%arg0: i32, %arg1: i32, %arg2: memref<1x8x32xf32, #tpu.memory_space<vmem>>, %arg3: memref<1x32xf32, #tpu.memory_space<vmem>>, %arg4: memref<1x32xf32, #tpu.memory_space<vmem>>, %arg5: memref<32x96xbf16, #tpu.memory_space<vmem>>, %arg6: memref<1x96xf32, #tpu.memory_space<vmem>>, %arg7: memref<1x8x32xbf16, #tpu.memory_space<vmem>>, %arg8: memref<1x4x1x8x8xbf16, #tpu.memory_space<vmem>>, %arg9: memref<1x1x8x32xbf16, #tpu.memory_space<vmem>>) attributes {dimension_semantics = [#tpu.dimension_semantics<parallel>, #tpu.dimension_semantics<parallel>], iteration_bounds = array<i64: 2, 1>, scalar_prefetch = 0 : i64, scratch_operands = 0 : i64, tpu.core_type = #tpu.core_type<tc>, window_params = [{transform_indices = @transform_0, window_bounds = array<i64: 1, 8, 32>}, {pipeline_mode = #tpu.pipeline_mode<synchronous>, transform_indices = @transform_1, window_bounds = array<i64: 1, 32>}, {pipeline_mode = #tpu.pipeline_mode<synchronous>, transform_indices = @transform_2, window_bounds = array<i64: 1, 32>}, {pipeline_mode = #tpu.pipeline_mode<synchronous>, transform_indices = @transform_3, window_bounds = array<i64: 32, 96>}, {pipeline_mode = #tpu.pipeline_mode<synchronous>, transform_indices = @transform_4, window_bounds = array<i64: 1, 96>}, {transform_indices = @transform_5, window_bounds = array<i64: 1, 8, 32>}, {transform_indices = @transform_6, window_bounds = array<i64: 1, 4, 1, 8, 8>}, {transform_indices = @transform_7, window_bounds = array<i64: 1, 1, 8, 32>}]} {
    %c0 = arith.constant 0 : index
    %c0_0 = arith.constant 0 : index
    %c0_1 = arith.constant 0 : index
    %0 = vector.load %arg2[%c0, %c0_0, %c0_1] : memref<1x8x32xf32, #tpu.memory_space<vmem>>, vector<1x8x32xf32>
    %1 = vector.shape_cast %0 : vector<1x8x32xf32> to vector<8x32xf32>
    %c0_2 = arith.constant 0 : index
    %c0_3 = arith.constant 0 : index
    %2 = vector.load %arg3[%c0_2, %c0_3] : memref<1x32xf32, #tpu.memory_space<vmem>>, vector<1x32xf32>
    %c0_4 = arith.constant 0 : index
    %c0_5 = arith.constant 0 : index
    %3 = vector.load %arg4[%c0_4, %c0_5] : memref<1x32xf32, #tpu.memory_space<vmem>>, vector<1x32xf32>
    %cst = arith.constant dense<0.000000e+00> : vector<8xf32>
    %4 = vector.multi_reduction <add>, %1, %cst [1] : vector<8x32xf32> to vector<8xf32>
    %5 = vector.shape_cast %4 : vector<8xf32> to vector<8x1xf32>
    %cst_6 = arith.constant 3.200000e+01 : f32
    %6 = vector.broadcast %cst_6 : f32 to vector<8x1xf32>
    %7 = arith.divf %5, %6 : vector<8x1xf32>
    %8 = vector.broadcast %7 : vector<8x1xf32> to vector<8x32xf32>
    %9 = arith.subf %1, %8 : vector<8x32xf32>
    %10 = arith.mulf %9, %9 : vector<8x32xf32>
    %cst_7 = arith.constant dense<0.000000e+00> : vector<8xf32>
    %11 = vector.multi_reduction <add>, %10, %cst_7 [1] : vector<8x32xf32> to vector<8xf32>
    %12 = vector.shape_cast %11 : vector<8xf32> to vector<8x1xf32>
    %cst_8 = arith.constant 3.200000e+01 : f32
    %13 = vector.broadcast %cst_8 : f32 to vector<8x1xf32>
    %14 = arith.divf %12, %13 : vector<8x1xf32>
    %cst_9 = arith.constant 9.99999974E-6 : f32
    %15 = vector.broadcast %cst_9 : f32 to vector<8x1xf32>
    %16 = arith.addf %14, %15 : vector<8x1xf32>
    %17 = math.rsqrt %16 : vector<8x1xf32>
    %18 = vector.broadcast %17 : vector<8x1xf32> to vector<8x32xf32>
    %19 = arith.mulf %9, %18 : vector<8x32xf32>
    %20 = vector.broadcast %2 : vector<1x32xf32> to vector<8x32xf32>
    %21 = arith.mulf %19, %20 : vector<8x32xf32>
    %22 = vector.broadcast %3 : vector<1x32xf32> to vector<8x32xf32>
    %23 = arith.addf %21, %22 : vector<8x32xf32>
    %24 = arith.truncf %23 : vector<8x32xf32> to vector<8x32xbf16>
    %c0_10 = arith.constant 0 : index
    %c0_11 = arith.constant 0 : index
    %25 = vector.load %arg5[%c0_10, %c0_11] : memref<32x96xbf16, #tpu.memory_space<vmem>>, vector<32x96xbf16>
    %cst_12 = arith.constant dense<0.000000e+00> : vector<8x96xf32>
    %26 = tpu.matmul %24, %25, %cst_12 {dimension_numbers = #tpu.dot_dimension_numbers<[1], [0], [0], [1], [0, 0, 1, 1], [], []>} : vector<8x32xbf16>, vector<32x96xbf16>, vector<8x96xf32> -> vector<8x96xf32>
    %c0_13 = arith.constant 0 : index
    %c0_14 = arith.constant 0 : index
    %27 = vector.load %arg6[%c0_13, %c0_14] : memref<1x96xf32, #tpu.memory_space<vmem>>, vector<1x96xf32>
    %28 = vector.broadcast %27 : vector<1x96xf32> to vector<8x96xf32>
    %29 = arith.addf %26, %28 : vector<8x96xf32>
    %30 = vector.extract_strided_slice %29 {offsets = [0, 0], sizes = [8, 32], strides = [1, 1]} : vector<8x96xf32> to vector<8x32xf32>
    %31 = arith.truncf %30 : vector<8x32xf32> to vector<8x32xbf16>
    %c0_15 = arith.constant 0 : index
    %c0_16 = arith.constant 0 : index
    %c0_17 = arith.constant 0 : index
    %32 = vector.load %arg7[%c0_15, %c0_16, %c0_17] : memref<1x8x32xbf16, #tpu.memory_space<vmem>>, vector<1x8x32xbf16>
    %33 = vector.shape_cast %32 : vector<1x8x32xbf16> to vector<8x32xbf16>
    %34 = vector.shape_cast %31 : vector<8x32xbf16> to vector<1x8x32xbf16>
    tpu.vector_store %arg7[%c0_15, %c0_16, %c0_17], %34 {strides = array<i32>} : memref<1x8x32xbf16, #tpu.memory_space<vmem>>, vector<1x8x32xbf16>,
    %35 = vector.extract_strided_slice %29 {offsets = [0, 64], sizes = [8, 32], strides = [1, 1]} : vector<8x96xf32> to vector<8x32xf32>
    %36 = arith.truncf %35 : vector<8x32xf32> to vector<8x32xbf16>
    %c0_18 = arith.constant 0 : index
    %c0_19 = arith.constant 0 : index
    %c0_20 = arith.constant 0 : index
    %c0_21 = arith.constant 0 : index
    %37 = vector.load %arg9[%c0_18, %c0_19, %c0_20, %c0_21] : memref<1x1x8x32xbf16, #tpu.memory_space<vmem>>, vector<1x1x8x32xbf16>
    %38 = vector.shape_cast %37 : vector<1x1x8x32xbf16> to vector<8x32xbf16>
    %39 = vector.shape_cast %36 : vector<8x32xbf16> to vector<1x1x8x32xbf16>
    tpu.vector_store %arg9[%c0_18, %c0_19, %c0_20, %c0_21], %39 {strides = array<i32>} : memref<1x1x8x32xbf16, #tpu.memory_space<vmem>>, vector<1x1x8x32xbf16>,
    %40 = vector.extract_strided_slice %29 {offsets = [0, 32], sizes = [8, 8], strides = [1, 1]} : vector<8x96xf32> to vector<8x8xf32>
    %41 = tpu.transpose %40, [1, 0] : vector<8x8xf32> -> vector<8x8xf32>
    %42 = arith.truncf %41 : vector<8x8xf32> to vector<8x8xbf16>
    %c0_22 = arith.constant 0 : index
    %c0_23 = arith.constant 0 : index
    %c0_24 = arith.constant 0 : index
    %c0_25 = arith.constant 0 : index
    %c0_26 = arith.constant 0 : index
    %43 = vector.load %arg8[%c0_22, %c0_23, %c0_24, %c0_25, %c0_26] : memref<1x4x1x8x8xbf16, #tpu.memory_space<vmem>>, vector<1x1x1x8x8xbf16>
    %44 = vector.shape_cast %43 : vector<1x1x1x8x8xbf16> to vector<8x8xbf16>
    %45 = vector.shape_cast %42 : vector<8x8xbf16> to vector<1x1x1x8x8xbf16>
    tpu.vector_store %arg8[%c0_22, %c0_23, %c0_24, %c0_25, %c0_26], %45 {strides = array<i32>} : memref<1x4x1x8x8xbf16, #tpu.memory_space<vmem>>, vector<1x1x1x8x8xbf16>,
    %46 = vector.extract_strided_slice %29 {offsets = [0, 40], sizes = [8, 8], strides = [1, 1]} : vector<8x96xf32> to vector<8x8xf32>
    %47 = tpu.transpose %46, [1, 0] : vector<8x8xf32> -> vector<8x8xf32>
    %48 = arith.truncf %47 : vector<8x8xf32> to vector<8x8xbf16>
    %c0_27 = arith.constant 0 : index
    %c1 = arith.constant 1 : index
    %c0_28 = arith.constant 0 : index
    %c0_29 = arith.constant 0 : index
    %c0_30 = arith.constant 0 : index
    %49 = vector.load %arg8[%c0_27, %c1, %c0_28, %c0_29, %c0_30] : memref<1x4x1x8x8xbf16, #tpu.memory_space<vmem>>, vector<1x1x1x8x8xbf16>
    %50 = vector.shape_cast %49 : vector<1x1x1x8x8xbf16> to vector<8x8xbf16>
    %51 = vector.shape_cast %48 : vector<8x8xbf16> to vector<1x1x1x8x8xbf16>
    tpu.vector_store %arg8[%c0_27, %c1, %c0_28, %c0_29, %c0_30], %51 {strides = array<i32>} : memref<1x4x1x8x8xbf16, #tpu.memory_space<vmem>>, vector<1x1x1x8x8xbf16>,
    %52 = vector.extract_strided_slice %29 {offsets = [0, 48], sizes = [8, 8], strides = [1, 1]} : vector<8x96xf32> to vector<8x8xf32>
    %53 = tpu.transpose %52, [1, 0] : vector<8x8xf32> -> vector<8x8xf32>
    %54 = arith.truncf %53 : vector<8x8xf32> to vector<8x8xbf16>
    %c0_31 = arith.constant 0 : index
    %c2 = arith.constant 2 : index
    %c0_32 = arith.constant 0 : index
    %c0_33 = arith.constant 0 : index
    %c0_34 = arith.constant 0 : index
    %55 = vector.load %arg8[%c0_31, %c2, %c0_32, %c0_33, %c0_34] : memref<1x4x1x8x8xbf16, #tpu.memory_space<vmem>>, vector<1x1x1x8x8xbf16>
    %56 = vector.shape_cast %55 : vector<1x1x1x8x8xbf16> to vector<8x8xbf16>
    %57 = vector.shape_cast %54 : vector<8x8xbf16> to vector<1x1x1x8x8xbf16>
    tpu.vector_store %arg8[%c0_31, %c2, %c0_32, %c0_33, %c0_34], %57 {strides = array<i32>} : memref<1x4x1x8x8xbf16, #tpu.memory_space<vmem>>, vector<1x1x1x8x8xbf16>,
    %58 = vector.extract_strided_slice %29 {offsets = [0, 56], sizes = [8, 8], strides = [1, 1]} : vector<8x96xf32> to vector<8x8xf32>
    %59 = tpu.transpose %58, [1, 0] : vector<8x8xf32> -> vector<8x8xf32>
    %60 = arith.truncf %59 : vector<8x8xf32> to vector<8x8xbf16>
    %c0_35 = arith.constant 0 : index
    %c3 = arith.constant 3 : index
    %c0_36 = arith.constant 0 : index
    %c0_37 = arith.constant 0 : index
    %c0_38 = arith.constant 0 : index
    %61 = vector.load %arg8[%c0_35, %c3, %c0_36, %c0_37, %c0_38] : memref<1x4x1x8x8xbf16, #tpu.memory_space<vmem>>, vector<1x1x1x8x8xbf16>
    %62 = vector.shape_cast %61 : vector<1x1x1x8x8xbf16> to vector<8x8xbf16>
    %63 = vector.shape_cast %60 : vector<8x8xbf16> to vector<1x1x1x8x8xbf16>
    tpu.vector_store %arg8[%c0_35, %c3, %c0_36, %c0_37, %c0_38], %63 {strides = array<i32>} : memref<1x4x1x8x8xbf16, #tpu.memory_space<vmem>>, vector<1x1x1x8x8xbf16>,
    return
  }
  func.func @transform_0(%arg0: i32, %arg1: i32) -> (i32, i32, i32) {
    %c0_i32 = arith.constant 0 : i32
    %c0_i32_0 = arith.constant 0 : i32
    return %arg0, %arg1, %c0_i32 : i32, i32, i32
  }
  func.func @transform_1(%arg0: i32, %arg1: i32) -> (i32, i32) {
    %c0_i32 = arith.constant 0 : i32
    %c0_i32_0 = arith.constant 0 : i32
    %c0_i32_1 = arith.constant 0 : i32
    return %c0_i32, %c0_i32_0 : i32, i32
  }
  func.func @transform_2(%arg0: i32, %arg1: i32) -> (i32, i32) {
    %c0_i32 = arith.constant 0 : i32
    %c0_i32_0 = arith.constant 0 : i32
    %c0_i32_1 = arith.constant 0 : i32
    return %c0_i32, %c0_i32_0 : i32, i32
  }
  func.func @transform_3(%arg0: i32, %arg1: i32) -> (i32, i32) {
    %c0_i32 = arith.constant 0 : i32
    %c0_i32_0 = arith.constant 0 : i32
    %c0_i32_1 = arith.constant 0 : i32
    return %c0_i32, %c0_i32_0 : i32, i32
  }
  func.func @transform_4(%arg0: i32, %arg1: i32) -> (i32, i32) {
    %c0_i32 = arith.constant 0 : i32
    %c0_i32_0 = arith.constant 0 : i32
    %c0_i32_1 = arith.constant 0 : i32
    return %c0_i32, %c0_i32_0 : i32, i32
  }
  func.func @transform_5(%arg0: i32, %arg1: i32) -> (i32, i32, i32) {
    %c0_i32 = arith.constant 0 : i32
    %c0_i32_0 = arith.constant 0 : i32
    return %arg0, %arg1, %c0_i32 : i32, i32, i32
  }
  func.func @transform_6(%arg0: i32, %arg1: i32) -> (i32, i32, i32, i32, i32) {
    %c0_i32 = arith.constant 0 : i32
    %c0_i32_0 = arith.constant 0 : i32
    %c0_i32_1 = arith.constant 0 : i32
    %c0_i32_2 = arith.constant 0 : i32
    return %arg0, %c0_i32, %arg1, %c0_i32_0, %c0_i32_1 : i32, i32, i32, i32, i32
  }
  func.func @transform_7(%arg0: i32, %arg1: i32) -> (i32, i32, i32, i32) {
    %c0_i32 = arith.constant 0 : i32
    %c0_i32_0 = arith.constant 0 : i32
    %c0_i32_1 = arith.constant 0 : i32
    return %arg0, %arg1, %c0_i32, %c0_i32_0 : i32, i32, i32, i32
  }
}

</mosaic_0001>

<bundles_post_ra>
// kernel: tpu_custom_call.1
= control target key start
LH: loop header
LB: loop body
LE: loop exit
PB: predicated region body
PF: predicated region fallthrough
CT: control target
= control target key end

     0   :  { %s1532_s0 = inlined_call_operand.hbm [shape: f32[2,8,32], index: 0, kind: input, shape index: {}]   ;;  %s1533_s1 = inlined_call_operand.vmem [shape: f32[1,32], index: 1, kind: input, shape index: {}]   ;;  %s1534_s2 = inlined_call_operand.vmem [shape: f32[1,32], index: 2, kind: input, shape index: {}]   ;;  %s1535_s3 = inlined_call_operand.hbm [shape: bf16[32,96], index: 3, kind: input, shape index: {}]   ;;  %s1536_s4 = inlined_call_operand.vmem [shape: f32[1,96], index: 4, kind: input, shape index: {}]   ;;  %s1537_s5 = inlined_call_operand.hbm [shape: bf16[2,8,32], index: 5, kind: output, shape index: {0}]   ;;  %s1538_s6 = inlined_call_operand.hbm [shape: bf16[2,4,1,8,8], index: 6, kind: output, shape index: {1}]   ;;  %s1539_s7 = inlined_call_operand.hbm [shape: bf16[2,1,8,32], index: 7, kind: output, shape index: {2}]  }
   0x1   :  { %1546 = sst [smem:[#allocation16_spill]] %s1535_s3 }
   0x2   :  { %13 = vsyncpa [#allocation3], 0 }
   0x3   :  { %15 = vsyncpa [#allocation3 + $0x1], 0 }
   0x4   :  { %16 = vsyncpa [#allocation6], 0 }
   0x5   :  { %17 = vsyncpa [#allocation4], 0 }
   0x6   :  { %19 = vsyncpa [#allocation4 + $0x1], 0 }
   0x7   :  { %20 = vsyncpa [#allocation9], 0 }
   0x8   :  { %22 = vsyncpa [#allocation9 + $0x1], 0  ;;  %s1231_s24 = smov 0   ;;  %s1233_s25 = smov 0  }
   0x9   :  { %s1235_s26 = smov 0   ;;  %s1237_s27 = smov 0  }
   0xa   :  { %s1239_s28 = smov 0   ;;  %s1241_s29 = smov 0  }
   0xb LB: > { %s1262_s30 = sadd.s32 4294967295, %s1174_s29   ;;  %s1543_s8 = sadd.s32 4294967294, %s1174_s29   ;;  %s1174_s29 = sphi %s1241_s29, %s28_s29   ;;  %s1170_s28 = sphi %s1239_s28, %s1570_s28   ;;  %s1166_s27 = sphi %s1237_s27, %s1569_s27   ;;  %s1162_s26 = sphi %s1235_s26, %s1568_s26   ;;  %s1158_s25 = sphi %s1233_s25, %s1567_s25   ;;  %s1154_s24 = sphi %s1231_s24, %s1566_s24  }
   0xc   : > { %p62_p0 = scmp.ne.s32.totalorder %s1158_s25, %s1154_s24  ;;  %p1540_p1 = scmp.eq.s32.totalorder %s1262_s30, 0 }
   0xd   : > { %p178_p3 = scmp.eq.s32.totalorder %s1543_s8, 1  ;;  %p823_p5 = scmp.ge.s32.totalorder %s1174_s29, 1 }
   0xe   : > { %p1273_p4 = por %p1540_p1, %p62_p0  ;;  %p241_p7 = scmp.lt.s32.totalorder %s1174_s29, 3 }
   0xf   : > { %p1278_p6 = por %p178_p3, %p62_p0  ;;  %s1176_s12 = smov [#allocation5]  }
  0x10   : > { %s1547_s9 = scalar_select %p1273_p4, 1, 0 }
  0x11   : > { %s1548_s10 = scalar_select %p1278_p6, 1, 0 }
  0x12   : > { %p1283_p8 = pnand %p823_p5, %p241_p7  ;;  %s259_s13 = sshll.u32 %s1176_s12, 4  ;;  %s260_s13 = int_to_ptr.vmem [resolvable:$true] %s259_s13 }
  0x13   : > { %s40_s15 = sadd.s32 1, %s1170_s28  ;;  %s1551_s3 = sld [smem:[#allocation16_spill]] }
  0x14   : > { %s1549_s11 = scalar_select %p1283_p8, 1, 0 }
  0x15   : > { %p878_p9 = pneg %p1283_p8 }
  0x17   : > { %p1292_p11 = pnand %p878_p9, %p1540_p1 }
  0x19   : > { %s970_s18 = scalar_lea.hbm %s1551_s3, 256  ;;  %p972_p13 = pneg %p1292_p11 }
  0x1a   : > { %p971_p12 = scmp.ne.s32.totalorder %s1551_s3, %s970_s18  ;;  %p977_p5 = scmp.lt.u32.totalorder %s970_s18, %s1551_s3 }
  0x1c   : > { %p973_p0 = pnand %p972_p13, %p971_p12 }
  0x1e   : > { %p974_p3 = pneg %p973_p0 }
  0x20   : > { %p979_p7 = pnand %p977_p5, %p974_p3 }
  0x22   : > { %982 = shalt.err (!%p979_p7)
}
  0x23   : > { %s983_s23 = scalar_lea.vmem %s260_s13, 256  ;;  %p991_p2 = scmp.lt.s32.totalorder %s260_s13, %s260_s13 }
  0x24   : > { %p984_p9 = scmp.ne.s32.totalorder %s260_s13, %s983_s23  ;;  %p992_p6 = scmp.lt.s32.totalorder %s983_s23, %s983_s23 }
  0x26   : > { %p986_p10 = pnand %p984_p9, %p972_p13  ;;  %p993_p4 = por %p992_p6, %p991_p2 }
  0x28   : > { %p987_p1 = pneg %p986_p10 }
  0x2a   : > { %p994_p8 = pnand %p993_p4, %p987_p1 }
  0x2c   : > { %997 = shalt.err (!%p994_p8)
}
  0x2d   : > { %s1177_s12 = smov 64   ;;  %s1178_s16 = smov 4  }
  0x2e   : > { %881 = dma.hbm_to_vmem [thread:$0]  (!%p1292_p11), %s1551_s3, 256, %s260_s13, [#allocation6], %s1177_s12, %s1177_s12, %s1178_s16  }
  0x2f   : > { %p42_p1 = scmp.ge.s32.totalorder %s40_s15, 2  ;;  %s49_s19 = sadd.s32 1, %s1162_s26 }
  0x30   : > { %p56_p2 = scmp.ne.s32.totalorder %s1162_s26, %s1158_s25  ;;  %p57_p4 = scmp.eq.s32.totalorder %s1174_s29, 0 }
  0x31   : > { %s1572_s15 = smov (%p42_p1, %s40_s15), 0  ;;  %p1554_p8 = scmp.eq.s32.totalorder %s1262_s30, 1 }
  0x32   : > { %1552 = sst [smem:[#allocation15_spill]] %s1572_s15  ;;  %p1319_p6 = por %p57_p4, %p56_p2 }
  0x33   : > { %p1325_p10 = por %p1554_p8, %p56_p2  ;;  %s44_s14 = ssub.s32 %s1170_s28, %s1572_s15 }
  0x34   : > { %p897_p12 = scmp.lt.s32.totalorder %s1174_s29, 2  ;;  %p47_p11 = scmp.eq.s32.totalorder %s44_s14, 0 }
  0x35   : > { %s276_s13 = sand.u32 1, %s1162_s26   ;;  %s827_s12 = sshll.u32 %s1170_s28, 7 }
  0x36   : > { %s826_s22 = sshll.u32 %s276_s13, 3  ;;  %s1340_s18 = scalar_lea.hbm %s1532_s0, %s827_s12 }
  0x37   : > { %s1334_s23 = scalar_select %p47_p11, %s1162_s26, %s49_s19  }
  0x38   : > { %s280_s8 = scalar_lea.vmem [#allocation2], %s826_s22  ;;  %p1346_p13 = pnand %p897_p12, %p1319_p6 }
  0x39   : > { %s288_s3 = sshll.u32 %s280_s8, 4  ;;  %s277_s19 = scalar_lea.sflag [#allocation3], %s276_s13  ;;  %s1342_s3 = int_to_ptr.vmem [resolvable:$true] %s288_s3 }
  0x3a   : > { %s998_s15 = scalar_lea.hbm %s1340_s18, 128  ;;  %p1000_p3 = pneg %p1346_p13 }
  0x3b   : > { %p999_p0 = scmp.ne.s32.totalorder %s1340_s18, %s998_s15  ;;  %s1003_s12 = scalar_lea.hbm %s1532_s0, 256 }
  0x3c   : > { %p1004_p9 = scmp.lt.u32.totalorder %s1340_s18, %s1532_s0  ;;  %p1005_p1 = scmp.lt.u32.totalorder %s1003_s12, %s998_s15 }
  0x3d   : > { %p1001_p5 = pnand %p1000_p3, %p999_p0  ;;  %p1007_p4 = scmp.lt.u32.totalorder %s998_s15, %s1340_s18 }
  0x3e   : > { %p1006_p2 = por %p1005_p1, %p1004_p9 }
  0x3f   : > { %p1002_p7 = pneg %p1001_p5 }
  0x40   : > { %p1008_p6 = por %p1007_p4, %p1006_p2 }
  0x42   : > { %p1009_p8 = pnand %p1008_p6, %p1002_p7 }
  0x44   : > { %1012 = shalt.err (!%p1009_p8)
}
  0x45   : > { %s1013_s13 = scalar_lea.vmem %s1342_s3, 128  ;;  %s1179_s17 = smov [#allocation2]  }
  0x46   : > { %p1014_p12 = scmp.ne.s32.totalorder %s1342_s3, %s1013_s13  ;;  %s1018_s22 = sshll.u32 %s1179_s17, 4  ;;  %s1019_s22 = int_to_ptr.vmem [resolvable:$false] %s1018_s22 }
  0x47   : > { %s1020_s8 = scalar_lea.vmem %s1019_s22, 256  ;;  %p1021_p5 = scmp.lt.s32.totalorder %s1342_s3, %s1019_s22 }
  0x48   : > { %p1016_p11 = pnand %p1014_p12, %p1000_p3  ;;  %p1022_p9 = scmp.lt.s32.totalorder %s1020_s8, %s1013_s13 }
  0x4a   : > { %p1017_p0 = pneg %p1016_p11  ;;  %p1023_p1 = por %p1022_p9, %p1021_p5 }
  0x4c   : > { %p1024_p2 = pnand %p1023_p1, %p1017_p0 }
  0x4e   : > { %1027 = shalt.err (!%p1024_p2)
}
  0x4f   : > { %885 = dma.hbm_to_vmem [thread:$0]  (!%p1346_p13), %s1340_s18, 128, %s1342_s3, %s277_s19  }
  0x50   : > { %p1557_p7 = scmp.ne.s32.totalorder %s1549_s11, 0 }
  0x51   : > { %s1378_s15 = sand.u32 (!%p1557_p7), 1, %s1158_s25   ;;  %p1558_p3 = scmp.ne.s32.totalorder (!%p1557_p7), %s1547_s9, 0 }
  0x52   : > { %297 = sbr.rel (%p1557_p7) target bundleno = 919 (0x397), region = 40  ;;  %s829_s12 = sshll.u32 (!%p1557_p7), %s1378_s15, 3 }
  0x53   : > { %s300_s20 = scalar_lea.sflag (!%p1557_p7), [#allocation3], %s1378_s15  ;;  %s303_s16 = scalar_lea.vmem (!%p1557_p7), [#allocation2], %s829_s12 }
  0x59   : > { %1137 = dma.done.wait (%p1558_p3), %s300_s20, 128  }
  0x5a   : > { %1139 = vsyncadd (%p1558_p3), %s300_s20, 4294967168  ;;  %p1559_p4 = scmp.eq.s32.totalorder %s1262_s30, 0 }
  0x5c   : > { %1141 = dma.done.wait (%p1559_p4), [#allocation6], 256   ;;  %p1560_p13 = pmov %p1559_p4 }
  0x5d   : > { %vm352_vm0 = vcmask 261120   ;;  %v349_v0 = vld [vmem:[%s303_s16] sm:$0xff]  ;;  %v966_v7 = vld [vmem:[#allocation5] sm:$0xff]   ;;  %v1180_v8 = vmov 0.0   ;;  %vm1181_vm1 = vmmov 0   ;;  %v967_v9 = vld [vmem:[#allocation5 + $0x8] sm:$0xff]  }
  0x5e   : > { %1143 = vsyncadd (%p1560_p13), [#allocation6], 4294967040  ;;  %v353_v1 = vsel %vm352_vm0, %v349_v0, 0.0  ;;  %858 = vmatprep.subr.bf16.mxu0 %v1180_v8  ;;  %862 = vmatprep.mubr.msk.bf16.mxu0 %vm1181_vm1, %v1180_v8  ;;  %v834_v14 = vld [vmem:[%s1533_s1] ss:$0 sm:$0xff]  ;;  %s831_s13 = sshll.u32 %s1378_s15, 2 }
  0x5f   : > { %354 = vadd.xlane.f32.xlu0 %v353_v1  ;;  %859 = vmatpush3.bf16.msra.mxu0 %v966_v7  ;;  %v835_v16 = vld [vmem:[%s1534_s2] ss:$0 sm:$0xff]  ;;  %vm449_vm2 = vcmask 257024   ;;  %s1182_s17 = smov 96   ;;  %s333_s22 = scalar_lea.vmem [#allocation7], %s831_s13 }
  0x60   : > { %860 = vmatprep.subr.bf16.mxu0 %v1180_v8  ;;  %v836_v20 = vld [vmem:[%s1536_s4] ss:$0 sm:$0xff]  ;;  %s1183_s8 = smov 88   ;;  %s1184_s12 = smov 80  }
  0x61   : > { %s1185_s20 = smov 72   ;;  %s1545_s16 = smov 64  }
  0x62   : > { %s1405_s3 = scalar_lea.vmem [#allocation10], %s831_s13  ;;  %s847_s9 = sshll.u32 %s1166_s27, 6 }
  0x63   : > { %861 = vmatpush3.bf16.msra.mxu0 %v967_v9  ;;  %s636_s11 = sshll.u32 %s333_s22, 4  ;;  %s1415_s19 = scalar_lea.hbm %s1537_s5, %s847_s9  ;;  %s637_s11 = int_to_ptr.vmem [resolvable:$true] %s636_s11 }
  0x64   : > { %s1187_s13 = smov [#allocation7]  }
  0xec   : > { %v355_v2 = vpop.xlane.xlu0 %354 }
  0xed   : > { %v357_v3 = vmul.f32 0.03125, %v355_v2 }
  0xef   : > { %v358_v4 = vsub.f32 %v349_v0, %v357_v3 }
  0xf1   : > { %v359_v5 = vmul.f32 %v358_v4, %v358_v4 }
  0xf3   : > { %v360_v6 = vsel %vm352_vm0, %v359_v5, 0.0 }
  0xf4   : > { %361 = vadd.xlane.f32.xlu0 %v360_v6 }
 0x181   : > { %v362_v10 = vpop.xlane.xlu0 %361 }
 0x182   : > { %v363_v11 = vmul.f32 0.03125, %v362_v10 }
 0x184   : > { %v364_v12 = vadd.f32 1e-05, %v363_v11 }
 0x186   : > { %968 = vrsqrt.f32 %v364_v12 }
 0x190   : > { %v969_v13 = vpop.eup %968 }
 0x191   : > { %v366_v15 = vmul.f32 %v969_v13, %v358_v4 }
 0x193   : > { %v373_v17 = vmul.f32 %v834_v14, %v366_v15 }
 0x195   : > { %v380_v18 = vadd.f32 %v835_v16, %v373_v17 }
 0x197   : > { %v381_v19 = vpack.c.bf16 %v380_v18, %v380_v18 }
 0x199   : > { %863 = vmatmul.mubr.msk.bf16.vlgmr.msra.gmra.mrb[0].mxu0 %vm352_vm0, %v381_v19 }
 0x26c   : > { %v442_v21 = vpop.f32.mrb[0].mxu0 }
 0x26d   : > { %v443_v22 = vadd.f32 %v836_v20, %v442_v21  ;;  %v864_v23 = vpop.f32.mrb[1].mxu0 }
 0x26e   : > { %v445_v24 = vpop.f32.mrb[2].mxu0 }
 0x26f   : > { %459 = vrot.lane.b32.xlu1 %v443_v22, %s1182_s17  ;;  %v865_v25 = vpop.f32.mrb[3].mxu0  ;;  %v448_v26 = vpack.c.bf16 %v443_v22, %v443_v22  ;;  %s612_s17 = scalar_lea.sflag [#allocation4], %s1378_s15 }
 0x271   : > { %450 = vst.msk [vmem:[%s333_s22] sm:$0xf] %vm449_vm2, %v448_v26 }
 0x273   : > { %497 = vrot.lane.b32.xlu1 %v443_v22, %s1183_s8  ;;  %s1028_s8 = scalar_lea.vmem %s637_s11, 64 }
 0x274   : > { %p1029_p6 = scmp.ne.s32.totalorder %s637_s11, %s1028_s8 }
 0x276   : > { %p1030_p8 = pnand %p1029_p6, %p1325_p10 }
 0x277   : > { %535 = vrot.lane.b32.xlu1 %v443_v22, %s1184_s12  ;;  %s1032_s12 = sshll.u32 %s1187_s13, 4  ;;  %s1033_s12 = int_to_ptr.vmem [resolvable:$false] %s1032_s12 }
 0x278   : > { %p1031_p12 = pneg %p1030_p8  ;;  %p1035_p11 = scmp.lt.s32.totalorder %s637_s11, %s1033_s12 }
 0x27b   : > { %573 = vrot.lane.b32.xlu1 %v443_v22, %s1185_s20  ;;  %s1034_s20 = scalar_lea.vmem %s1033_s12, 128 }
 0x27c   : > { %p1036_p0 = scmp.lt.s32.totalorder %s1034_s20, %s1028_s8 }
 0x27e   : > { %p1037_p5 = por %p1036_p0, %p1035_p11 }
 0x27f   : > { %454 = vrot.lane.b32.xlu1 %v448_v26, %s1545_s16 }
 0x280   : > { %p1038_p9 = pnand %p1037_p5, %p1031_p12 }
 0x2e1   : > { %v460_v27 = vpop.permute.xlu1 %459 }
 0x2e2   : > { %462 = vxpose.xlu0.b32.start.end [1/1] (short) (narrow) %v460_v27, 8 }
 0x2e5   : > { %v498_v28 = vpop.permute.xlu1 %497 }
 0x2e9   : > { %v536_v29 = vpop.permute.xlu1 %535 }
 0x2ea   : > { %v959_v30 = vpack.i.bf16 %v536_v29, %v498_v28 }
 0x2ec   : > { %960 = vxpose.xlu1.b32.start.end [1/1] (short) (narrow) %v959_v30, 8 }
 0x2ed   : > { %v574_v31 = vpop.permute.xlu1 %573 }
 0x2ee   : > { %576 = vxpose.xlu0.b32.start.end [1/1] (short) (narrow) %v574_v31, 8 }
 0x2f1   : > { %v455_v32 = vpop.permute.xlu1 %454 }
 0x2f2   : > { %457 = vst.msk [vmem:[%s1405_s3] sm:$0xf] %vm449_vm2, %v455_v32 }
 0x2f3   : > { %1041 = shalt.err (!%p1038_p9)
}
 0x2f4   : > { %s1042_s22 = scalar_lea.hbm %s1415_s19, 64  ;;  %s1046_s13 = scalar_lea.hbm %s1537_s5, 128 }
 0x2f5   : > { %p1043_p1 = scmp.ne.s32.totalorder %s1415_s19, %s1042_s22  ;;  %p1047_p3 = scmp.lt.u32.totalorder %s1415_s19, %s1537_s5 }
 0x2f6   : > { %p1048_p4 = scmp.lt.u32.totalorder %s1046_s13, %s1042_s22  ;;  %p1050_p6 = scmp.lt.u32.totalorder %s1042_s22, %s1415_s19 }
 0x2f7   : > { %p1044_p2 = pnand %p1043_p1, %p1325_p10 }
 0x2f8   : > { %p1049_p13 = por %p1048_p4, %p1047_p3 }
 0x2f9   : > { %p1045_p7 = pneg %p1044_p2 }
 0x2fa   : > { %p1051_p8 = por %p1050_p6, %p1049_p13 }
 0x2fc   : > { %p1052_p12 = pnand %p1051_p8, %p1045_p7 }
 0x2fe   : > { %1055 = shalt.err (!%p1052_p12)
}
 0x2ff   : > { %872 = dma.vmem_to_hbm [thread:$0]  (%p1325_p10), %s637_s11, 64, %s1415_s19, %s612_s17   ;;  %vm495_vm3 = vcmask 60416  }
 0x300   : > { %s832_s8 = sshll.u32 %s1378_s15, 4  ;;  %s616_s22 = sand.u32 1, %s1262_s30  }
 0x301   : > { %s340_s16 = scalar_lea.vmem [#allocation8], %s832_s8  ;;  %s854_s18 = sshll.u32 %s1166_s27, 8 }
 0x302   : > { %s650_s20 = sshll.u32 %s340_s16, 4  ;;  %s667_s14 = sshll.u32 %s1405_s3, 4  ;;  %s1440_s20 = int_to_ptr.vmem [resolvable:$true] %s650_s20  ;;  %s1454_s14 = int_to_ptr.vmem [resolvable:$true] %s667_s14 }
 0x303   : > { %s1445_s19 = scalar_lea.hbm %s1538_s6, %s854_s18  ;;  %s1452_s17 = scalar_lea.hbm %s1539_s7, %s847_s9 }
 0x304   : > { %s1459_s13 = scalar_lea.sflag [#allocation9], %s616_s22  ;;  %s1056_s12 = scalar_lea.vmem %s1440_s20, 256 }
 0x305   : > { %p1057_p11 = scmp.ne.s32.totalorder %s1440_s20, %s1056_s12  ;;  %s1188_s27 = smov [#allocation8]  }
 0x306   : > { %s1060_s8 = sshll.u32 %s1188_s27, 4  ;;  %s1061_s8 = int_to_ptr.vmem [resolvable:$false] %s1060_s8 }
 0x307   : > { %p1058_p0 = pnand %p1057_p11, %p1325_p10  ;;  %s1062_s9 = scalar_lea.vmem %s1061_s8, 512 }
 0x308   : > { %p1063_p9 = scmp.lt.s32.totalorder %s1440_s20, %s1061_s8  ;;  %p1064_p1 = scmp.lt.s32.totalorder %s1062_s9, %s1056_s12 }
 0x309   : > { %p1059_p5 = pneg %p1058_p0 }
 0x30a   : > { %p1065_p2 = por %p1064_p1, %p1063_p9 }
 0x30c   : > { %p1066_p7 = pnand %p1065_p2, %p1059_p5 }
 0x362   : > { %v478_v33 = vpop.trf.xlu0 }
 0x363   : > { %v494_v34 = vpack.c.bf16 %v478_v33, %v478_v33 }
 0x365   : > { %496 = vst.msk [vmem:[%s340_s16] sm:$0xf] %vm495_vm3, %v494_v34 }
 0x36c   : > { %v961_v35 = vpop.trf.xlu1 }
 0x36d   : > { %v965_v36 = vunpack.i.h.bf16 %v961_v35  ;;  %v962_v37 = vunpack.i.l.bf16 %v961_v35 }
 0x36e   : > { %v592_v38 = vpop.trf.xlu0 }
 0x36f   : > { %v570_v39 = vpack.c.bf16 %v965_v36, %v965_v36  ;;  %v532_v40 = vpack.c.bf16 %v962_v37, %v962_v37  ;;  %v608_v41 = vpack.c.bf16 %v592_v38, %v592_v38 }
 0x371   : > { %842 = vst.msk [vmem:[%s340_s16 + $0x8] sm:$0xf] %vm495_vm3, %v570_v39  ;;  %841 = vst.msk [vmem:[%s340_s16 + $0x4] sm:$0xf] %vm495_vm3, %v532_v40 }
 0x372   : > { %843 = vst.msk [vmem:[%s340_s16 + $0xc] sm:$0xf] %vm495_vm3, %v608_v41 }
 0x373   : > { %1069 = shalt.err (!%p1066_p7)
}
 0x374   : > { %s1070_s16 = scalar_lea.hbm %s1445_s19, 256  ;;  %s1074_s15 = scalar_lea.hbm %s1538_s6, 512 }
 0x375   : > { %p1071_p3 = scmp.ne.s32.totalorder %s1445_s19, %s1070_s16  ;;  %p1075_p6 = scmp.lt.u32.totalorder %s1445_s19, %s1538_s6 }
 0x376   : > { %p1076_p8 = scmp.lt.u32.totalorder %s1074_s15, %s1070_s16  ;;  %p1078_p11 = scmp.lt.u32.totalorder %s1070_s16, %s1445_s19 }
 0x377   : > { %p1072_p4 = pnand %p1071_p3, %p1325_p10 }
 0x378   : > { %p1077_p12 = por %p1076_p8, %p1075_p6 }
 0x379   : > { %p1073_p13 = pneg %p1072_p4 }
 0x37a   : > { %p1079_p0 = por %p1078_p11, %p1077_p12 }
 0x37c   : > { %p1080_p5 = pnand %p1079_p0, %p1073_p13 }
 0x37e   : > { %1083 = shalt.err (!%p1080_p5)
}
 0x37f   : > { %s1189_s3 = smov 4   ;;  %s1561_s12 = smov 64  }
 0x380   : > { %873 = dma.vmem_to_hbm [thread:$0]  (%p1325_p10), %s1440_s20, 256, %s1445_s19, %s1459_s13, %s1561_s12, %s1561_s12, %s1189_s3  }
 0x381   : > { %s1084_s27 = scalar_lea.vmem %s1454_s14, 64  ;;  %s1190_s8 = smov [#allocation10]  }
 0x382   : > { %p1085_p9 = scmp.ne.s32.totalorder %s1454_s14, %s1084_s27  ;;  %s1088_s9 = sshll.u32 %s1190_s8, 4  ;;  %s1089_s9 = int_to_ptr.vmem [resolvable:$false] %s1088_s9 }
 0x383   : > { %s1090_s16 = scalar_lea.vmem %s1089_s9, 128  ;;  %p1091_p7 = scmp.lt.s32.totalorder %s1454_s14, %s1089_s9 }
 0x384   : > { %p1086_p1 = pnand %p1085_p9, %p1325_p10  ;;  %p1092_p3 = scmp.lt.s32.totalorder %s1090_s16, %s1084_s27 }
 0x386   : > { %p1087_p2 = pneg %p1086_p1  ;;  %p1093_p4 = por %p1092_p3, %p1091_p7 }
 0x388   : > { %p1094_p13 = pnand %p1093_p4, %p1087_p2 }
 0x38a   : > { %1097 = shalt.err (!%p1094_p13)
}
 0x38b   : > { %s1098_s20 = scalar_lea.hbm %s1452_s17, 64  ;;  %s1102_s18 = scalar_lea.hbm %s1539_s7, 128 }
 0x38c   : > { %p1099_p6 = scmp.ne.s32.totalorder %s1452_s17, %s1098_s20  ;;  %p1103_p11 = scmp.lt.u32.totalorder %s1452_s17, %s1539_s7 }
 0x38d   : > { %p1104_p0 = scmp.lt.u32.totalorder %s1102_s18, %s1098_s20  ;;  %p1106_p9 = scmp.lt.u32.totalorder %s1098_s20, %s1452_s17 }
 0x38e   : > { %p1100_p8 = pnand %p1099_p6, %p1325_p10 }
 0x38f   : > { %p1105_p5 = por %p1104_p0, %p1103_p11 }
 0x390   : > { %p1101_p12 = pneg %p1100_p8 }
 0x391   : > { %p1107_p1 = por %p1106_p9, %p1105_p5 }
 0x393   : > { %p1108_p2 = pnand %p1107_p1, %p1101_p12 }
 0x395   : > { %1111 = shalt.err (!%p1108_p2)
}
 0x396   : > { %874 = dma.vmem_to_hbm [thread:$0]  (%p1325_p10), %s1454_s14, 64, %s1452_s17, %s1459_s13  }
 0x397 PF: > { %s679_s30 = sand.u32 1, %s1154_s24   ;;  %p1562_p7 = scmp.ne.s32.totalorder %s1548_s10, 0 }
 0x398   : > { %p1563_p3 = scmp.ge.s32.totalorder %s1174_s29, 2  ;;  %s680_s3 = scalar_lea.sflag [#allocation4], %s679_s30 }
 0x39a   : > { %p887_p4 = pnand %p1563_p3, %p1562_p7 }
 0x39c   : > { %1145 = dma.done.wait (!%p887_p4), %s680_s3, 64  }
 0x39d   : > { %1147 = vsyncadd (!%p887_p4), %s680_s3, 4294967232  ;;  %s1564_s12 = sadd.s32 4294967294, %s1174_s29  }
 0x39e   : > { %s688_s27 = sand.u32 1, %s1564_s12  }
 0x39f   : > { %s689_s8 = scalar_lea.sflag [#allocation9], %s688_s27 }
 0x3a0   : > { %1149 = dma.done.wait (!%p887_p4), %s689_s8, 320  }
 0x3a1   : > { %1151 = vsyncadd (!%p887_p4), %s689_s8, 4294966976  ;;  %s28_s29 = sadd.s32 1, %s1174_s29   ;;  %s1565_s21 = sld [smem:[#allocation15_spill]] }
 0x3a2   : > { %p25_p10 = scmp.ge.s32.totalorder %s28_s29, 4   ;;  %s1566_s24 = smov %s1158_s25 }
 0x3a3   : > { %s1567_s25 = smov %s1162_s26  ;;  %s1568_s26 = smov %s1334_s23 }
 0x3a4   : > { %s1569_s27 = smov %s1170_s28  ;;  %27 = sbr.rel (!%p25_p10) target bundleno = 11 (0xb), region = 124 }
 0x3a7   : > { %s1570_s28 = smov %s1565_s21 }
 0x3ab   :  { %703 = vsyncpa [#allocation3], 1 }
 0x3ac   :  { %705 = vsyncpa [#allocation3 + $0x1], 1 }
 0x3ad   :  { %706 = vsyncpa [#allocation6], 1 }
 0x3ae   :  { %707 = vsyncpa [#allocation4], 1 }
 0x3af   :  { %709 = vsyncpa [#allocation4 + $0x1], 1 }
 0x3b0   :  { %710 = vsyncpa [#allocation9], 1 }
 0x3b1   :  { %712 = vsyncpa [#allocation9 + $0x1], 1 }

// kernel: tpu_custom_call.1
= control target key start
LH: loop header
LB: loop body
LE: loop exit
PB: predicated region body
PF: predicated region fallthrough
CT: control target
= control target key end

     0   :  { %s1532_s0 = inlined_call_operand.hbm [shape: f32[2,8,32], index: 0, kind: input, shape index: {}]   ;;  %s1533_s1 = inlined_call_operand.vmem [shape: f32[1,32], index: 1, kind: input, shape index: {}]   ;;  %s1534_s2 = inlined_call_operand.vmem [shape: f32[1,32], index: 2, kind: input, shape index: {}]   ;;  %s1535_s3 = inlined_call_operand.hbm [shape: bf16[32,96], index: 3, kind: input, shape index: {}]   ;;  %s1536_s4 = inlined_call_operand.vmem [shape: f32[1,96], index: 4, kind: input, shape index: {}]   ;;  %s1537_s5 = inlined_call_operand.hbm [shape: bf16[2,8,32], index: 5, kind: output, shape index: {0}]   ;;  %s1538_s6 = inlined_call_operand.hbm [shape: bf16[2,4,1,8,8], index: 6, kind: output, shape index: {1}]   ;;  %s1539_s7 = inlined_call_operand.hbm [shape: bf16[2,1,8,32], index: 7, kind: output, shape index: {2}]  }
   0x1   :  { %1546 = sst [smem:[#allocation16_spill]] %s1535_s3 }
   0x2   :  { %13 = vsyncpa [#allocation3], 0 }
   0x3   :  { %15 = vsyncpa [#allocation3 + $0x1], 0 }
   0x4   :  { %16 = vsyncpa [#allocation6], 0 }
   0x5   :  { %17 = vsyncpa [#allocation4], 0 }
   0x6   :  { %19 = vsyncpa [#allocation4 + $0x1], 0 }
   0x7   :  { %20 = vsyncpa [#allocation9], 0 }
   0x8   :  { %22 = vsyncpa [#allocation9 + $0x1], 0  ;;  %s1231_s24 = smov 0   ;;  %s1233_s25 = smov 0  }
   0x9   :  { %s1235_s26 = smov 0   ;;  %s1237_s27 = smov 0  }
   0xa   :  { %s1239_s28 = smov 0   ;;  %s1241_s29 = smov 0  }
   0xb LB: > { %s1262_s30 = sadd.s32 4294967295, %s1174_s29   ;;  %s1543_s8 = sadd.s32 4294967294, %s1174_s29   ;;  %s1174_s29 = sphi %s1241_s29, %s28_s29   ;;  %s1170_s28 = sphi %s1239_s28, %s1570_s28   ;;  %s1166_s27 = sphi %s1237_s27, %s1569_s27   ;;  %s1162_s26 = sphi %s1235_s26, %s1568_s26   ;;  %s1158_s25 = sphi %s1233_s25, %s1567_s25   ;;  %s1154_s24 = sphi %s1231_s24, %s1566_s24  }
   0xc   : > { %p62_p0 = scmp.ne.s32.totalorder %s1158_s25, %s1154_s24  ;;  %p1540_p1 = scmp.eq.s32.totalorder %s1262_s30, 0 }
   0xd   : > { %p178_p3 = scmp.eq.s32.totalorder %s1543_s8, 1  ;;  %p823_p5 = scmp.ge.s32.totalorder %s1174_s29, 1 }
   0xe   : > { %p1273_p4 = por %p1540_p1, %p62_p0  ;;  %p241_p7 = scmp.lt.s32.totalorder %s1174_s29, 3 }
   0xf   : > { %p1278_p6 = por %p178_p3, %p62_p0  ;;  %s1176_s12 = smov [#allocation5]  }
  0x10   : > { %s1547_s9 = scalar_select %p1273_p4, 1, 0 }
  0x11   : > { %s1548_s10 = scalar_select %p1278_p6, 1, 0 }
  0x12   : > { %p1283_p8 = pnand %p823_p5, %p241_p7  ;;  %s259_s13 = sshll.u32 %s1176_s12, 4  ;;  %s260_s13 = int_to_ptr.vmem [resolvable:$true] %s259_s13 }
  0x13   : > { %s40_s15 = sadd.s32 1, %s1170_s28  ;;  %s1551_s3 = sld [smem:[#allocation16_spill]] }
  0x14   : > { %s1549_s11 = scalar_select %p1283_p8, 1, 0 }
  0x15   : > { %p878_p9 = pneg %p1283_p8 }
  0x17   : > { %p1292_p11 = pnand %p878_p9, %p1540_p1 }
  0x19   : > { %s970_s18 = scalar_lea.hbm %s1551_s3, 256  ;;  %p972_p13 = pneg %p1292_p11 }
  0x1a   : > { %p971_p12 = scmp.ne.s32.totalorder %s1551_s3, %s970_s18  ;;  %p977_p5 = scmp.lt.u32.totalorder %s970_s18, %s1551_s3 }
  0x1c   : > { %p973_p0 = pnand %p972_p13, %p971_p12 }
  0x1e   : > { %p974_p3 = pneg %p973_p0 }
  0x20   : > { %p979_p7 = pnand %p977_p5, %p974_p3 }
  0x22   : > { %982 = shalt.err (!%p979_p7)
}
  0x23   : > { %s983_s23 = scalar_lea.vmem %s260_s13, 256  ;;  %p991_p2 = scmp.lt.s32.totalorder %s260_s13, %s260_s13 }
  0x24   : > { %p984_p9 = scmp.ne.s32.totalorder %s260_s13, %s983_s23  ;;  %p992_p6 = scmp.lt.s32.totalorder %s983_s23, %s983_s23 }
  0x26   : > { %p986_p10 = pnand %p984_p9, %p972_p13  ;;  %p993_p4 = por %p992_p6, %p991_p2 }
  0x28   : > { %p987_p1 = pneg %p986_p10 }
  0x2a   : > { %p994_p8 = pnand %p993_p4, %p987_p1 }
  0x2c   : > { %997 = shalt.err (!%p994_p8)
}
  0x2d   : > { %s1177_s12 = smov 64   ;;  %s1178_s16 = smov 4  }
  0x2e   : > { %881 = dma.hbm_to_vmem [thread:$0]  (!%p1292_p11), %s1551_s3, 256, %s260_s13, [#allocation6], %s1177_s12, %s1177_s12, %s1178_s16  }
  0x2f   : > { %p42_p1 = scmp.ge.s32.totalorder %s40_s15, 2  ;;  %s49_s19 = sadd.s32 1, %s1162_s26 }
  0x30   : > { %p56_p2 = scmp.ne.s32.totalorder %s1162_s26, %s1158_s25  ;;  %p57_p4 = scmp.eq.s32.totalorder %s1174_s29, 0 }
  0x31   : > { %s1572_s15 = smov (%p42_p1, %s40_s15), 0  ;;  %p1554_p8 = scmp.eq.s32.totalorder %s1262_s30, 1 }
  0x32   : > { %1552 = sst [smem:[#allocation15_spill]] %s1572_s15  ;;  %p1319_p6 = por %p57_p4, %p56_p2 }
  0x33   : > { %p1325_p10 = por %p1554_p8, %p56_p2  ;;  %s44_s14 = ssub.s32 %s1170_s28, %s1572_s15 }
  0x34   : > { %p897_p12 = scmp.lt.s32.totalorder %s1174_s29, 2  ;;  %p47_p11 = scmp.eq.s32.totalorder %s44_s14, 0 }
  0x35   : > { %s276_s13 = sand.u32 1, %s1162_s26   ;;  %s827_s12 = sshll.u32 %s1170_s28, 7 }
  0x36   : > { %s826_s22 = sshll.u32 %s276_s13, 3  ;;  %s1340_s18 = scalar_lea.hbm %s1532_s0, %s827_s12 }
  0x37   : > { %s1334_s23 = scalar_select %p47_p11, %s1162_s26, %s49_s19  }
  0x38   : > { %s280_s8 = scalar_lea.vmem [#allocation2], %s826_s22  ;;  %p1346_p13 = pnand %p897_p12, %p1319_p6 }
  0x39   : > { %s288_s3 = sshll.u32 %s280_s8, 4  ;;  %s277_s19 = scalar_lea.sflag [#allocation3], %s276_s13  ;;  %s1342_s3 = int_to_ptr.vmem [resolvable:$true] %s288_s3 }
  0x3a   : > { %s998_s15 = scalar_lea.hbm %s1340_s18, 128  ;;  %p1000_p3 = pneg %p1346_p13 }
  0x3b   : > { %p999_p0 = scmp.ne.s32.totalorder %s1340_s18, %s998_s15  ;;  %s1003_s12 = scalar_lea.hbm %s1532_s0, 256 }
  0x3c   : > { %p1004_p9 = scmp.lt.u32.totalorder %s1340_s18, %s1532_s0  ;;  %p1005_p1 = scmp.lt.u32.totalorder %s1003_s12, %s998_s15 }
  0x3d   : > { %p1001_p5 = pnand %p1000_p3, %p999_p0  ;;  %p1007_p4 = scmp.lt.u32.totalorder %s998_s15, %s1340_s18 }
  0x3e   : > { %p1006_p2 = por %p1005_p1, %p1004_p9 }
  0x3f   : > { %p1002_p7 = pneg %p1001_p5 }
  0x40   : > { %p1008_p6 = por %p1007_p4, %p1006_p2 }
  0x42   : > { %p1009_p8 = pnand %p1008_p6, %p1002_p7 }
  0x44   : > { %1012 = shalt.err (!%p1009_p8)
}
  0x45   : > { %s1013_s13 = scalar_lea.vmem %s1342_s3, 128  ;;  %s1179_s17 = smov [#allocation2]  }
  0x46   : > { %p1014_p12 = scmp.ne.s32.totalorder %s1342_s3, %s1013_s13  ;;  %s1018_s22 = sshll.u32 %s1179_s17, 4  ;;  %s1019_s22 = int_to_ptr.vmem [resolvable:$false] %s1018_s22 }
  0x47   : > { %s1020_s8 = scalar_lea.vmem %s1019_s22, 256  ;;  %p1021_p5 = scmp.lt.s32.totalorder %s1342_s3, %s1019_s22 }
  0x48   : > { %p1016_p11 = pnand %p1014_p12, %p1000_p3  ;;  %p1022_p9 = scmp.lt.s32.totalorder %s1020_s8, %s1013_s13 }
  0x4a   : > { %p1017_p0 = pneg %p1016_p11  ;;  %p1023_p1 = por %p1022_p9, %p1021_p5 }
  0x4c   : > { %p1024_p2 = pnand %p1023_p1, %p1017_p0 }
  0x4e   : > { %1027 = shalt.err (!%p1024_p2)
}
  0x4f   : > { %885 = dma.hbm_to_vmem [thread:$0]  (!%p1346_p13), %s1340_s18, 128, %s1342_s3, %s277_s19  }
  0x50   : > { %p1557_p7 = scmp.ne.s32.totalorder %s1549_s11, 0 }
  0x51   : > { %s1378_s15 = sand.u32 (!%p1557_p7), 1, %s1158_s25   ;;  %p1558_p3 = scmp.ne.s32.totalorder (!%p1557_p7), %s1547_s9, 0 }
  0x52   : > { %297 = sbr.rel (%p1557_p7) target bundleno = 919 (0x397), region = 40  ;;  %s829_s12 = sshll.u32 (!%p1557_p7), %s1378_s15, 3 }
  0x53   : > { %s300_s20 = scalar_lea.sflag (!%p1557_p7), [#allocation3], %s1378_s15  ;;  %s303_s16 = scalar_lea.vmem (!%p1557_p7), [#allocation2], %s829_s12 }
  0x59   : > { %1137 = dma.done.wait (%p1558_p3), %s300_s20, 128  }
  0x5a   : > { %1139 = vsyncadd (%p1558_p3), %s300_s20, 4294967168  ;;  %p1559_p4 = scmp.eq.s32.totalorder %s1262_s30, 0 }
  0x5c   : > { %1141 = dma.done.wait (%p1559_p4), [#allocation6], 256   ;;  %p1560_p13 = pmov %p1559_p4 }
  0x5d   : > { %vm352_vm0 = vcmask 261120   ;;  %v349_v0 = vld [vmem:[%s303_s16] sm:$0xff]  ;;  %v966_v7 = vld [vmem:[#allocation5] sm:$0xff]   ;;  %v1180_v8 = vmov 0.0   ;;  %vm1181_vm1 = vmmov 0   ;;  %v967_v9 = vld [vmem:[#allocation5 + $0x8] sm:$0xff]  }
  0x5e   : > { %1143 = vsyncadd (%p1560_p13), [#allocation6], 4294967040  ;;  %v353_v1 = vsel %vm352_vm0, %v349_v0, 0.0  ;;  %858 = vmatprep.subr.bf16.mxu0 %v1180_v8  ;;  %862 = vmatprep.mubr.msk.bf16.mxu0 %vm1181_vm1, %v1180_v8  ;;  %v834_v14 = vld [vmem:[%s1533_s1] ss:$0 sm:$0xff]  ;;  %s831_s13 = sshll.u32 %s1378_s15, 2 }
  0x5f   : > { %354 = vadd.xlane.f32.xlu0 %v353_v1  ;;  %859 = vmatpush3.bf16.msra.mxu0 %v966_v7  ;;  %v835_v16 = vld [vmem:[%s1534_s2] ss:$0 sm:$0xff]  ;;  %vm449_vm2 = vcmask 257024   ;;  %s1182_s17 = smov 96   ;;  %s333_s22 = scalar_lea.vmem [#allocation7], %s831_s13 }
  0x60   : > { %860 = vmatprep.subr.bf16.mxu0 %v1180_v8  ;;  %v836_v20 = vld [vmem:[%s1536_s4] ss:$0 sm:$0xff]  ;;  %s1183_s8 = smov 88   ;;  %s1184_s12 = smov 80  }
  0x61   : > { %s1185_s20 = smov 72   ;;  %s1545_s16 = smov 64  }
  0x62   : > { %s1405_s3 = scalar_lea.vmem [#allocation10], %s831_s13  ;;  %s847_s9 = sshll.u32 %s1166_s27, 6 }
  0x63   : > { %861 = vmatpush3.bf16.msra.mxu0 %v967_v9  ;;  %s636_s11 = sshll.u32 %s333_s22, 4  ;;  %s1415_s19 = scalar_lea.hbm %s1537_s5, %s847_s9  ;;  %s637_s11 = int_to_ptr.vmem [resolvable:$true] %s636_s11 }
  0x64   : > { %s1187_s13 = smov [#allocation7]  }
  0xec   : > { %v355_v2 = vpop.xlane.xlu0 %354 }
  0xed   : > { %v357_v3 = vmul.f32 0.03125, %v355_v2 }
  0xef   : > { %v358_v4 = vsub.f32 %v349_v0, %v357_v3 }
  0xf1   : > { %v359_v5 = vmul.f32 %v358_v4, %v358_v4 }
  0xf3   : > { %v360_v6 = vsel %vm352_vm0, %v359_v5, 0.0 }
  0xf4   : > { %361 = vadd.xlane.f32.xlu0 %v360_v6 }
 0x181   : > { %v362_v10 = vpop.xlane.xlu0 %361 }
 0x182   : > { %v363_v11 = vmul.f32 0.03125, %v362_v10 }
 0x184   : > { %v364_v12 = vadd.f32 1e-05, %v363_v11 }
 0x186   : > { %968 = vrsqrt.f32 %v364_v12 }
 0x190   : > { %v969_v13 = vpop.eup %968 }
 0x191   : > { %v366_v15 = vmul.f32 %v969_v13, %v358_v4 }
 0x193   : > { %v373_v17 = vmul.f32 %v834_v14, %v366_v15 }
 0x195   : > { %v380_v18 = vadd.f32 %v835_v16, %v373_v17 }
 0x197   : > { %v381_v19 = vpack.c.bf16 %v380_v18, %v380_v18 }
 0x199   : > { %863 = vmatmul.mubr.msk.bf16.vlgmr.msra.gmra.mrb[0].mxu0 %vm352_vm0, %v381_v19 }
 0x26c   : > { %v442_v21 = vpop.f32.mrb[0].mxu0 }
 0x26d   : > { %v443_v22 = vadd.f32 %v836_v20, %v442_v21  ;;  %v864_v23 = vpop.f32.mrb[1].mxu0 }
 0x26e   : > { %v445_v24 = vpop.f32.mrb[2].mxu0 }
 0x26f   : > { %459 = vrot.lane.b32.xlu1 %v443_v22, %s1182_s17  ;;  %v865_v25 = vpop.f32.mrb[3].mxu0  ;;  %v448_v26 = vpack.c.bf16 %v443_v22, %v443_v22  ;;  %s612_s17 = scalar_lea.sflag [#allocation4], %s1378_s15 }
 0x271   : > { %450 = vst.msk [vmem:[%s333_s22] sm:$0xf] %vm449_vm2, %v448_v26 }
 0x273   : > { %497 = vrot.lane.b32.xlu1 %v443_v22, %s1183_s8  ;;  %s1028_s8 = scalar_lea.vmem %s637_s11, 64 }
 0x274   : > { %p1029_p6 = scmp.ne.s32.totalorder %s637_s11, %s1028_s8 }
 0x276   : > { %p1030_p8 = pnand %p1029_p6, %p1325_p10 }
 0x277   : > { %535 = vrot.lane.b32.xlu1 %v443_v22, %s1184_s12  ;;  %s1032_s12 = sshll.u32 %s1187_s13, 4  ;;  %s1033_s12 = int_to_ptr.vmem [resolvable:$false] %s1032_s12 }
 0x278   : > { %p1031_p12 = pneg %p1030_p8  ;;  %p1035_p11 = scmp.lt.s32.totalorder %s637_s11, %s1033_s12 }
 0x27b   : > { %573 = vrot.lane.b32.xlu1 %v443_v22, %s1185_s20  ;;  %s1034_s20 = scalar_lea.vmem %s1033_s12, 128 }
 0x27c   : > { %p1036_p0 = scmp.lt.s32.totalorder %s1034_s20, %s1028_s8 }
 0x27e   : > { %p1037_p5 = por %p1036_p0, %p1035_p11 }
 0x27f   : > { %454 = vrot.lane.b32.xlu1 %v448_v26, %s1545_s16 }
 0x280   : > { %p1038_p9 = pnand %p1037_p5, %p1031_p12 }
 0x2e1   : > { %v460_v27 = vpop.permute.xlu1 %459 }
 0x2e2   : > { %462 = vxpose.xlu0.b32.start.end [1/1] (short) (narrow) %v460_v27, 8 }
 0x2e5   : > { %v498_v28 = vpop.permute.xlu1 %497 }
 0x2e9   : > { %v536_v29 = vpop.permute.xlu1 %535 }
 0x2ea   : > { %v959_v30 = vpack.i.bf16 %v536_v29, %v498_v28 }
 0x2ec   : > { %960 = vxpose.xlu1.b32.start.end [1/1] (short) (narrow) %v959_v30, 8 }
 0x2ed   : > { %v574_v31 = vpop.permute.xlu1 %573 }
 0x2ee   : > { %576 = vxpose.xlu0.b32.start.end [1/1] (short) (narrow) %v574_v31, 8 }
 0x2f1   : > { %v455_v32 = vpop.permute.xlu1 %454 }
 0x2f2   : > { %457 = vst.msk [vmem:[%s1405_s3] sm:$0xf] %vm449_vm2, %v455_v32 }
 0x2f3   : > { %1041 = shalt.err (!%p1038_p9)
}
 0x2f4   : > { %s1042_s22 = scalar_lea.hbm %s1415_s19, 64  ;;  %s1046_s13 = scalar_lea.hbm %s1537_s5, 128 }
 0x2f5   : > { %p1043_p1 = scmp.ne.s32.totalorder %s1415_s19, %s1042_s22  ;;  %p1047_p3 = scmp.lt.u32.totalorder %s1415_s19, %s1537_s5 }
 0x2f6   : > { %p1048_p4 = scmp.lt.u32.totalorder %s1046_s13, %s1042_s22  ;;  %p1050_p6 = scmp.lt.u32.totalorder %s1042_s22, %s1415_s19 }
 0x2f7   : > { %p1044_p2 = pnand %p1043_p1, %p1325_p10 }
 0x2f8   : > { %p1049_p13 = por %p1048_p4, %p1047_p3 }
 0x2f9   : > { %p1045_p7 = pneg %p1044_p2 }
 0x2fa   : > { %p1051_p8 = por %p1050_p6, %p1049_p13 }
 0x2fc   : > { %p1052_p12 = pnand %p1051_p8, %p1045_p7 }
 0x2fe   : > { %1055 = shalt.err (!%p1052_p12)
}
 0x2ff   : > { %872 = dma.vmem_to_hbm [thread:$0]  (%p1325_p10), %s637_s11, 64, %s1415_s19, %s612_s17   ;;  %vm495_vm3 = vcmask 60416  }
 0x300   : > { %s832_s8 = sshll.u32 %s1378_s15, 4  ;;  %s616_s22 = sand.u32 1, %s1262_s30  }
 0x301   : > { %s340_s16 = scalar_lea.vmem [#allocation8], %s832_s8  ;;  %s854_s18 = sshll.u32 %s1166_s27, 8 }
 0x302   : > { %s650_s20 = sshll.u32 %s340_s16, 4  ;;  %s667_s14 = sshll.u32 %s1405_s3, 4  ;;  %s1440_s20 = int_to_ptr.vmem [resolvable:$true] %s650_s20  ;;  %s1454_s14 = int_to_ptr.vmem [resolvable:$true] %s667_s14 }
 0x303   : > { %s1445_s19 = scalar_lea.hbm %s1538_s6, %s854_s18  ;;  %s1452_s17 = scalar_lea.hbm %s1539_s7, %s847_s9 }
 0x304   : > { %s1459_s13 = scalar_lea.sflag [#allocation9], %s616_s22  ;;  %s1056_s12 = scalar_lea.vmem %s1440_s20, 256 }
 0x305   : > { %p1057_p11 = scmp.ne.s32.totalorder %s1440_s20, %s1056_s12  ;;  %s1188_s27 = smov [#allocation8]  }
 0x306   : > { %s1060_s8 = sshll.u32 %s1188_s27, 4  ;;  %s1061_s8 = int_to_ptr.vmem [resolvable:$false] %s1060_s8 }
 0x307   : > { %p1058_p0 = pnand %p1057_p11, %p1325_p10  ;;  %s1062_s9 = scalar_lea.vmem %s1061_s8, 512 }
 0x308   : > { %p1063_p9 = scmp.lt.s32.totalorder %s1440_s20, %s1061_s8  ;;  %p1064_p1 = scmp.lt.s32.totalorder %s1062_s9, %s1056_s12 }
 0x309   : > { %p1059_p5 = pneg %p1058_p0 }
 0x30a   : > { %p1065_p2 = por %p1064_p1, %p1063_p9 }
 0x30c   : > { %p1066_p7 = pnand %p1065_p2, %p1059_p5 }
 0x362   : > { %v478_v33 = vpop.trf.xlu0 }
 0x363   : > { %v494_v34 = vpack.c.bf16 %v478_v33, %v478_v33 }
 0x365   : > { %496 = vst.msk [vmem:[%s340_s16] sm:$0xf] %vm495_vm3, %v494_v34 }
 0x36c   : > { %v961_v35 = vpop.trf.xlu1 }
 0x36d   : > { %v965_v36 = vunpack.i.h.bf16 %v961_v35  ;;  %v962_v37 = vunpack.i.l.bf16 %v961_v35 }
 0x36e   : > { %v592_v38 = vpop.trf.xlu0 }
 0x36f   : > { %v570_v39 = vpack.c.bf16 %v965_v36, %v965_v36  ;;  %v532_v40 = vpack.c.bf16 %v962_v37, %v962_v37  ;;  %v608_v41 = vpack.c.bf16 %v592_v38, %v592_v38 }
 0x371   : > { %842 = vst.msk [vmem:[%s340_s16 + $0x8] sm:$0xf] %vm495_vm3, %v570_v39  ;;  %841 = vst.msk [vmem:[%s340_s16 + $0x4] sm:$0xf] %vm495_vm3, %v532_v40 }
 0x372   : > { %843 = vst.msk [vmem:[%s340_s16 + $0xc] sm:$0xf] %vm495_vm3, %v608_v41 }
 0x373   : > { %1069 = shalt.err (!%p1066_p7)
}
 0x374   : > { %s1070_s16 = scalar_lea.hbm %s1445_s19, 256  ;;  %s1074_s15 = scalar_lea.hbm %s1538_s6, 512 }
 0x375   : > { %p1071_p3 = scmp.ne.s32.totalorder %s1445_s19, %s1070_s16  ;;  %p1075_p6 = scmp.lt.u32.totalorder %s1445_s19, %s1538_s6 }
 0x376   : > { %p1076_p8 = scmp.lt.u32.totalorder %s1074_s15, %s1070_s16  ;;  %p1078_p11 = scmp.lt.u32.totalorder %s1070_s16, %s1445_s19 }
 0x377   : > { %p1072_p4 = pnand %p1071_p3, %p1325_p10 }
 0x378   : > { %p1077_p12 = por %p1076_p8, %p1075_p6 }
 0x379   : > { %p1073_p13 = pneg %p1072_p4 }
 0x37a   : > { %p1079_p0 = por %p1078_p11, %p1077_p12 }
 0x37c   : > { %p1080_p5 = pnand %p1079_p0, %p1073_p13 }
 0x37e   : > { %1083 = shalt.err (!%p1080_p5)
}
 0x37f   : > { %s1189_s3 = smov 4   ;;  %s1561_s12 = smov 64  }
 0x380   : > { %873 = dma.vmem_to_hbm [thread:$0]  (%p1325_p10), %s1440_s20, 256, %s1445_s19, %s1459_s13, %s1561_s12, %s1561_s12, %s1189_s3  }
 0x381   : > { %s1084_s27 = scalar_lea.vmem %s1454_s14, 64  ;;  %s1190_s8 = smov [#allocation10]  }
 0x382   : > { %p1085_p9 = scmp.ne.s32.totalorder %s1454_s14, %s1084_s27  ;;  %s1088_s9 = sshll.u32 %s1190_s8, 4  ;;  %s1089_s9 = int_to_ptr.vmem [resolvable:$false] %s1088_s9 }
 0x383   : > { %s1090_s16 = scalar_lea.vmem %s1089_s9, 128  ;;  %p1091_p7 = scmp.lt.s32.totalorder %s1454_s14, %s1089_s9 }
 0x384   : > { %p1086_p1 = pnand %p1085_p9, %p1325_p10  ;;  %p1092_p3 = scmp.lt.s32.totalorder %s1090_s16, %s1084_s27 }
 0x386   : > { %p1087_p2 = pneg %p1086_p1  ;;  %p1093_p4 = por %p1092_p3, %p1091_p7 }
 0x388   : > { %p1094_p13 = pnand %p1093_p4, %p1087_p2 }
 0x38a   : > { %1097 = shalt.err (!%p1094_p13)
}
 0x38b   : > { %s1098_s20 = scalar_lea.hbm %s1452_s17, 64  ;;  %s1102_s18 = scalar_lea.hbm %s1539_s7, 128 }
 0x38c   : > { %p1099_p6 = scmp.ne.s32.totalorder %s1452_s17, %s1098_s20  ;;  %p1103_p11 = scmp.lt.u32.totalorder %s1452_s17, %s1539_s7 }
 0x38d   : > { %p1104_p0 = scmp.lt.u32.totalorder %s1102_s18, %s1098_s20  ;;  %p1106_p9 = scmp.lt.u32.totalorder %s1098_s20, %s1452_s17 }
 0x38e   : > { %p1100_p8 = pnand %p1099_p6, %p1325_p10 }
 0x38f   : > { %p1105_p5 = por %p1104_p0, %p1103_p11 }
 0x390   : > { %p1101_p12 = pneg %p1100_p8 }
 0x391   : > { %p1107_p1 = por %p1106_p9, %p1105_p5 }
 0x393   : > { %p1108_p2 = pnand %p1107_p1, %p1101_p12 }
 0x395   : > { %1111 = shalt.err (!%p1108_p2)
}
 0x396   : > { %874 = dma.vmem_to_hbm [thread:$0]  (%p1325_p10), %s1454_s14, 64, %s1452_s17, %s1459_s13  }
 0x397 PF: > { %s679_s30 = sand.u32 1, %s1154_s24   ;;  %p1562_p7 = scmp.ne.s32.totalorder %s1548_s10, 0 }
 0x398   : > { %p1563_p3 = scmp.ge.s32.totalorder %s1174_s29, 2  ;;  %s680_s3 = scalar_lea.sflag [#allocation4], %s679_s30 }
 0x39a   : > { %p887_p4 = pnand %p1563_p3, %p1562_p7 }
 0x39c   : > { %1145 = dma.done.wait (!%p887_p4), %s680_s3, 64  }
 0x39d   : > { %1147 = vsyncadd (!%p887_p4), %s680_s3, 4294967232  ;;  %s1564_s12 = sadd.s32 4294967294, %s1174_s29  }
 0x39e   : > { %s688_s27 = sand.u32 1, %s1564_s12  }
 0x39f   : > { %s689_s8 = scalar_lea.sflag [#allocation9], %s688_s27 }
 0x3a0   : > { %1149 = dma.done.wait (!%p887_p4), %s689_s8, 320  }
 0x3a1   : > { %1151 = vsyncadd (!%p887_p4), %s689_s8, 4294966976  ;;  %s28_s29 = sadd.s32 1, %s1174_s29   ;;  %s1565_s21 = sld [smem:[#allocation15_spill]] }
 0x3a2   : > { %p25_p10 = scmp.ge.s32.totalorder %s28_s29, 4   ;;  %s1566_s24 = smov %s1158_s25 }
 0x3a3   : > { %s1567_s25 = smov %s1162_s26  ;;  %s1568_s26 = smov %s1334_s23 }
 0x3a4   : > { %s1569_s27 = smov %s1170_s28  ;;  %27 = sbr.rel (!%p25_p10) target bundleno = 11 (0xb), region = 124 }
 0x3a7   : > { %s1570_s28 = smov %s1565_s21 }
 0x3ab   :  { %703 = vsyncpa [#allocation3], 1 }
 0x3ac   :  { %705 = vsyncpa [#allocation3 + $0x1], 1 }
 0x3ad   :  { %706 = vsyncpa [#allocation6], 1 }
 0x3ae   :  { %707 = vsyncpa [#allocation4], 1 }
 0x3af   :  { %709 = vsyncpa [#allocation4 + $0x1], 1 }
 0x3b0   :  { %710 = vsyncpa [#allocation9], 1 }
 0x3b1   :  { %712 = vsyncpa [#allocation9 + $0x1], 1 }

</bundles_post_ra>
